<compile_context>
chip_gen: v7x
topology: tpu7x:2x2x1
jax: 0.10.0
libtpu: 0.0.40
codegen_flags: <defaults>
</compile_context>

<pallas_src>
import jax
import jax.numpy as jnp
from jax.experimental import pallas as pl
from jax.experimental.pallas import tpu as pltpu

C = 768          # hidden dim hardcoded in the module
T, H, W = 8, 7, 7
HW = H * W       # 49
SEQ = 1 + T * HW  # 393

_VMEM_LIMIT_BYTES = 32 * 1024 * 1024   # requested scoped VMEM (safe on v5e..v7x)
_VMEM_BUDGET_BYTES = 24 * 1024 * 1024  # per-step footprint cap (headroom under limit)


def _head_kernel(x_ref, out_ref):
    # x_ref:   [bb, 393, C]  full backbone features (cls token + 8*49 tokens)
    # out_ref: [bb, 49,  C]  mean over the 8 temporal token groups (lane-dense)
    #
    # Per-t accumulation keeps live temporaries to one f32 [bb, 49, C] slab;
    # the 7 extra VPU adds are free filler under the HBM DMA.
    acc = x_ref[:, pl.ds(1, HW), :].astype(jnp.float32)
    for t in range(1, T):
        acc = acc + x_ref[:, pl.ds(1 + t * HW, HW), :].astype(jnp.float32)
    out_ref[...] = (acc * (1.0 / T)).astype(out_ref.dtype)


def _per_batch_vmem_bytes(itemsize):
    """Double-buffered in/out blocks + the live f32 accumulator, per batch row."""
    in_blk = SEQ * C * itemsize
    out_blk = HW * C * itemsize
    acc = HW * C * 4
    return 2 * (in_blk + out_blk) + acc


def _tpu_cores_per_device():
    """TensorCores one pallas_call can shard a 'parallel' grid axis across."""
    try:
        kind = jax.devices()[0].device_kind.lower()
    except Exception:
        return 2
    # v5e / v6e are single-TensorCore chips: fewest grid steps wins.
    if any(tag in kind for tag in ("v5 lite", "v5e", "v5litepod", "v6 lite", "v6e")):
        return 1
    # v4 / v7x style megacore (or unknown): prefer >= num_cores grid steps.
    return 2


def _pick_block_b(B, itemsize, num_cores):
    max_bb = max(1, _VMEM_BUDGET_BYTES // _per_batch_vmem_bytes(itemsize))
    if num_cores <= 1 or B == 1:
        bb = min(B, max_bb)                       # largest VMEM-safe block
    else:
        bb = min(pl.cdiv(B, num_cores), max_bb, B)  # keep >= num_cores steps
    return int(max(1, bb))


def aclassification_forward(x, *, block_b=None):
    """x: [B, 393, 768] backbone features (f32 or bf16). Returns [B, 768, 7, 7]."""
    B = x.shape[0]
    assert x.shape[1] == SEQ and x.shape[2] == C, x.shape
    if block_b is None:
        block_b = _pick_block_b(B, jnp.dtype(x.dtype).itemsize, _tpu_cores_per_device())

    mean_t = pl.pallas_call(
        _head_kernel,
        out_shape=jax.ShapeDtypeStruct((B, HW, C), x.dtype),
        grid=(pl.cdiv(B, block_b),),
        in_specs=[
            # Second-to-last dim (393) equals the full array dim and the last
            # dim (768) is a multiple of 128 -> (8,128) rule satisfied; x goes
            # straight from HBM into the kernel with no pre-copy.
            pl.BlockSpec((block_b, SEQ, C), lambda b: (b, 0, 0)),
        ],
        out_specs=pl.BlockSpec((block_b, HW, C), lambda b: (b, 0, 0)),
        compiler_params=pltpu.CompilerParams(
            dimension_semantics=("parallel",),
            vmem_limit_bytes=_VMEM_LIMIT_BYTES,
        ),
    )(x)

    # [B, 49, 768] and [B, 768, 49] are the same flat buffer (row-major
    # regroup); in the natural layout the cls add is a plain broadcast that
    # XLA fuses into a single small elementwise op (no scrambled cls map, no
    # extra HBM input stream for the kernel).
    out = mean_t.reshape(B, C, HW) + x[:, 0, :, None]
    return out.reshape(B, C, H, W)


def _reference(x):
    """Pure-JAX reference of the exact torch semantics."""
    B = x.shape[0]
    tok = x[:, 1:, :].reshape(B, T, C, H, W).astype(jnp.float32)
    cls = x[:, 0, :].reshape(B, 1, C, 1, 1).astype(jnp.float32)
    return jnp.mean(tok + cls, axis=1)


if __name__ == "__main__":
    # TODO(synk): feature_modelv2 (MViT backbone + pretrained checkpoint from a
    # URL + YAML config) has no self-contained Pallas equivalent; synthetic
    # backbone features stand in for its output.
    key = jax.random.PRNGKey(0)
    B = 2
    x = jax.random.normal(key, (B, SEQ, C), dtype=jnp.float32)

    out = jax.block_until_ready(aclassification_forward(x))
    assert out.shape == (B, C, H, W), out.shape
    assert jnp.allclose(out, _reference(x), atol=1e-5, rtol=1e-5)

    # Non-divisor batch: ragged last block via grid = cdiv(B, block_b).
    x3 = jax.random.normal(jax.random.PRNGKey(1), (3, SEQ, C), dtype=jnp.float32)
    out3 = jax.block_until_ready(aclassification_forward(x3, block_b=2))
    assert out3.shape == (3, C, H, W), out3.shape
    assert jnp.allclose(out3, _reference(x3), atol=1e-5, rtol=1e-5)

    # bf16 features: kernel accumulates in f32, stores in the input dtype.
    xb = x.astype(jnp.bfloat16)
    outb = jax.block_until_ready(aclassification_forward(xb))
    assert jnp.allclose(outb.astype(jnp.float32), _reference(xb), atol=5e-2, rtol=5e-2)

    print("KERNEL_OK")
</pallas_src>

<mosaic_0001>
module attributes {stable_mosaic.version = 11 : i64} {
  func.func @_head_kernel(%arg0: i32, %arg1: memref<1x393x768xf32, #tpu.memory_space<vmem>>, %arg2: memref<1x49x768xf32, #tpu.memory_space<vmem>>) attributes {dimension_semantics = [#tpu.dimension_semantics<parallel>], iteration_bounds = array<i64: 2>, scalar_prefetch = 0 : i64, scratch_operands = 0 : i64, tpu.core_type = #tpu.core_type<tc>, window_params = [{transform_indices = @transform_0, window_bounds = array<i64: 1, 393, 768>}, {transform_indices = @transform_1, window_bounds = array<i64: 1, 49, 768>}]} {
    %c0 = arith.constant 0 : index
    %c1 = arith.constant 1 : index
    %c0_0 = arith.constant 0 : index
    %0 = vector.load %arg1[%c0, %c1, %c0_0] : memref<1x393x768xf32, #tpu.memory_space<vmem>>, vector<1x49x768xf32>
    %c0_1 = arith.constant 0 : index
    %c50 = arith.constant 50 : index
    %c0_2 = arith.constant 0 : index
    %1 = vector.load %arg1[%c0_1, %c50, %c0_2] : memref<1x393x768xf32, #tpu.memory_space<vmem>>, vector<1x49x768xf32>
    %2 = arith.addf %0, %1 : vector<1x49x768xf32>
    %c0_3 = arith.constant 0 : index
    %c99 = arith.constant 99 : index
    %c0_4 = arith.constant 0 : index
    %3 = vector.load %arg1[%c0_3, %c99, %c0_4] : memref<1x393x768xf32, #tpu.memory_space<vmem>>, vector<1x49x768xf32>
    %4 = arith.addf %2, %3 : vector<1x49x768xf32>
    %c0_5 = arith.constant 0 : index
    %c148 = arith.constant 148 : index
    %c0_6 = arith.constant 0 : index
    %5 = vector.load %arg1[%c0_5, %c148, %c0_6] : memref<1x393x768xf32, #tpu.memory_space<vmem>>, vector<1x49x768xf32>
    %6 = arith.addf %4, %5 : vector<1x49x768xf32>
    %c0_7 = arith.constant 0 : index
    %c197 = arith.constant 197 : index
    %c0_8 = arith.constant 0 : index
    %7 = vector.load %arg1[%c0_7, %c197, %c0_8] : memref<1x393x768xf32, #tpu.memory_space<vmem>>, vector<1x49x768xf32>
    %8 = arith.addf %6, %7 : vector<1x49x768xf32>
    %c0_9 = arith.constant 0 : index
    %c246 = arith.constant 246 : index
    %c0_10 = arith.constant 0 : index
    %9 = vector.load %arg1[%c0_9, %c246, %c0_10] : memref<1x393x768xf32, #tpu.memory_space<vmem>>, vector<1x49x768xf32>
    %10 = arith.addf %8, %9 : vector<1x49x768xf32>
    %c0_11 = arith.constant 0 : index
    %c295 = arith.constant 295 : index
    %c0_12 = arith.constant 0 : index
    %11 = vector.load %arg1[%c0_11, %c295, %c0_12] : memref<1x393x768xf32, #tpu.memory_space<vmem>>, vector<1x49x768xf32>
    %12 = arith.addf %10, %11 : vector<1x49x768xf32>
    %c0_13 = arith.constant 0 : index
    %c344 = arith.constant 344 : index
    %c0_14 = arith.constant 0 : index
    %13 = vector.load %arg1[%c0_13, %c344, %c0_14] : memref<1x393x768xf32, #tpu.memory_space<vmem>>, vector<1x49x768xf32>
    %14 = arith.addf %12, %13 : vector<1x49x768xf32>
    %cst = arith.constant 1.250000e-01 : f32
    %15 = vector.broadcast %cst : f32 to vector<1x49x768xf32>
    %16 = arith.mulf %14, %15 : vector<1x49x768xf32>
    %c0_15 = arith.constant 0 : index
    %c0_16 = arith.constant 0 : index
    %c0_17 = arith.constant 0 : index
    %17 = vector.load %arg2[%c0_15, %c0_16, %c0_17] : memref<1x49x768xf32, #tpu.memory_space<vmem>>, vector<1x49x768xf32>
    tpu.vector_store %arg2[%c0_15, %c0_16, %c0_17], %16 {strides = array<i32>} : memref<1x49x768xf32, #tpu.memory_space<vmem>>, vector<1x49x768xf32>,
    return
  }
  func.func @transform_0(%arg0: i32) -> (i32, i32, i32) {
    %c0_i32 = arith.constant 0 : i32
    %c0_i32_0 = arith.constant 0 : i32
    %c0_i32_1 = arith.constant 0 : i32
    return %arg0, %c0_i32, %c0_i32_0 : i32, i32, i32
  }
  func.func @transform_1(%arg0: i32) -> (i32, i32, i32) {
    %c0_i32 = arith.constant 0 : i32
    %c0_i32_0 = arith.constant 0 : i32
    %c0_i32_1 = arith.constant 0 : i32
    return %arg0, %c0_i32, %c0_i32_0 : i32, i32, i32
  }
}

</mosaic_0001>

<bundles_post_ra>
// kernel: tpu_custom_call.1
= control target key start
LH: loop header
LB: loop body
LE: loop exit
PB: predicated region body
PF: predicated region fallthrough
CT: control target
= control target key end

     0   :  { %s2226_s6 = smov 0   ;;  %s4590_s0 = inlined_call_operand.vmem [shape: f32[2,393,768], index: 0, kind: input, shape index: {}]   ;;  %s4591_s1 = inlined_call_operand.vmem [shape: f32[2,49,768], index: 1, kind: output, shape index: {}]  }
   0x1 LB: > { %s2189_s7 = sadd.s32 4294967295, %s2214_s6   ;;  %p2193_p0 = scmp.ge.s32.totalorder %s2214_s6, 1  ;;  %s2214_s6 = sphi %s2226_s6, %s11_s6  }
   0x2   : > { %p87_p1 = scmp.lt.s32.totalorder %s2214_s6, 3 }
   0x4   : > { %p88_p2 = pnand %p2193_p0, %p87_p1 }
   0x6   : > { %91 = sbr.rel (%p88_p2) target bundleno = 336 (0x150), region = 24 }
   0xd   : > { %p107_p3 = scmp.lt.s32.totalorder %s2189_s7, 1  ;;  %vm243_vm0 = vcmask 1046528   ;;  %vm490_vm1 = vcmask 1045504   ;;  %vm737_vm2 = vcmask 1044480   ;;  %vm984_vm3 = vcmask 1043456  }
   0xe   : > { %vm1231_vm4 = vcmask 1042432   ;;  %vm1478_vm5 = vcmask 1041408   ;;  %vm1725_vm6 = vcmask 1040384  }
   0xf   : > { %s5201_s7 = smov (!%p107_p3, %s2189_s7), 1 }
  0x10   : > { %s2198_s8 = smul.u32 2400, %s5201_s7 }
  0x11   : > { %s2199_s12 = smul.u32 336, %s5201_s7 }
  0x12   : > { %s2240_s11 = scalar_lea.vmem %s4590_s0, %s2198_s8 }
  0x13   : > { %v117_v0 = vld [vmem:[%s2240_s11] sm:$0xfe]  ;;  %v123_v1 = vld [vmem:[%s2240_s11 + $0x30] sm:$0xff]  ;;  %v160_v53 = vld [vmem:[%s2240_s11 + $0x128] sm:$0xfc]  ;;  %s2367_s15 = scalar_lea.vmem %s4591_s1, %s2199_s12 }
  0x14   : > { %v159_v2 = vld [vmem:[%s2240_s11 + $0x120] sm:$0xfc]  ;;  %v165_v3 = vld [vmem:[%s2240_s11 + $0x150] sm:$0xff]  ;;  %v166_v54 = vld [vmem:[%s2240_s11 + $0x158] sm:$0xff] }
  0x15   : > { %v2247_v4 = vld [vmem:[%s2240_s11 + $0x180] sm:$0xff]  ;;  %v244_v5 = vrot.slane %v159_v2, 1  ;;  %v245_v7 = vrot.slane %v165_v3, 1  ;;  %v412_v9 = vld [vmem:[%s2240_s11 + $0x270] sm:$0xff]  ;;  %v2302_v55 = vld [vmem:[%s2240_s11 + $0x188] sm:$0xff] }
  0x16   : > { %v406_v6 = vld [vmem:[%s2240_s11 + $0x240] sm:$0xf8]  ;;  %v4628_v8 = vrot.slane %v2247_v4, 1  ;;  %v659_v12 = vld [vmem:[%s2240_s11 + $0x390] sm:$0xff]  ;;  %v492_v13 = vrot.slane %v412_v9, 2  ;;  %v2314_v2 = vld [vmem:[%s2240_s11 + $0x2a8] sm:$0xff] }
  0x17   : > { %v2253_v10 = vld [vmem:[%s2240_s11 + $0x2a0] sm:$0xff]  ;;  %v491_v11 = vrot.slane %v406_v6, 2  ;;  %v739_v17 = vrot.slane %v659_v12, 3  ;;  %v246_v18 = vsel %vm243_vm0, %v244_v5, %v245_v7  ;;  %v906_v23 = vld [vmem:[%s2240_s11 + $0x4b0] sm:$0xff]  ;;  %v407_v60 = vld [vmem:[%s2240_s11 + $0x248] sm:$0xf8] }
  0x18   : > { %v4627_v14 = vrot.slane %v2253_v10, 2  ;;  %v653_v15 = vld [vmem:[%s2240_s11 + $0x360] sm:$0xf0]  ;;  %v263_v19 = vsel %vm243_vm0, %v245_v7, %v4628_v8  ;;  %v364_v25 = vadd.f32 %v246_v18, %v117_v0  ;;  %v1153_v30 = vld [vmem:[%s2240_s11 + $0x5d0] sm:$0xff]  ;;  %v986_v35 = vrot.slane %v906_v23, 4  ;;  %v124_v6 = vld [vmem:[%s2240_s11 + $0x38] sm:$0xff] }
  0x19   : > { %v2259_v16 = vld [vmem:[%s2240_s11 + $0x3c0] sm:$0xff]  ;;  %v738_v20 = vrot.slane %v653_v15, 3  ;;  %v370_v26 = vadd.f32 %v263_v19, %v123_v1  ;;  %v493_v27 = vsel %vm490_vm1, %v491_v11, %v492_v13  ;;  %v1400_v37 = vld [vmem:[%s2240_s11 + $0x6f0] sm:$0xff]  ;;  %v1233_v45 = vrot.slane %v1153_v30, 5  ;;  %v413_v1 = vld [vmem:[%s2240_s11 + $0x278] sm:$0xff] }
  0x1a   : > { %v4625_v21 = vrot.slane %v2259_v16, 3  ;;  %v900_v22 = vld [vmem:[%s2240_s11 + $0x480] sm:$0xe0]  ;;  %v510_v28 = vsel %vm490_vm1, %v492_v13, %v4627_v14  ;;  %v611_v38 = vadd.f32 %v493_v27, %v364_v25  ;;  %v1641_v43 = vld [vmem:[%s2240_s11 + $0x810] sm:$0xff]  ;;  %v1480_v52 = vrot.slane %v1400_v37, 6  ;;  %v660_v19 = vld [vmem:[%s2240_s11 + $0x398] sm:$0xff] }
  0x1b   : > { %v2269_v24 = vld [vmem:[%s2240_s11 + $0x4e0] sm:$0xff]  ;;  %v740_v32 = vsel %vm737_vm2, %v738_v20, %v739_v17  ;;  %v985_v34 = vrot.slane %v900_v22, 4  ;;  %v617_v39 = vadd.f32 %v510_v28, %v370_v26  ;;  %v1726_v59 = vrot.slane %v1641_v43, 7  ;;  %v118_v5 = vld [vmem:[%s2240_s11 + $0x8] sm:$0xfe]  ;;  %v664_v8 = vld [vmem:[%s2240_s11 + $0x3b8] sm:$0xff] }
  0x1c   : > { %v1147_v29 = vld [vmem:[%s2240_s11 + $0x5a0] sm:$0xc0]  ;;  %v757_v33 = vsel %vm737_vm2, %v739_v17, %v4625_v21  ;;  %v4623_v40 = vrot.slane %v2269_v24, 4  ;;  %v858_v49 = vadd.f32 %v740_v32, %v611_v38  ;;  %v247_v7 = vrot.slane %v160_v53, 1  ;;  %v654_v18 = vld [vmem:[%s2240_s11 + $0x368] sm:$0xf0] }
  0x1d   : > { %v2278_v31 = vld [vmem:[%s2240_s11 + $0x600] sm:$0xff]  ;;  %v1232_v41 = vrot.slane %v1147_v29, 5  ;;  %v987_v44 = vsel %vm984_vm3, %v985_v34, %v986_v35  ;;  %v864_v50 = vadd.f32 %v757_v33, %v617_v39  ;;  %v248_v9 = vrot.slane %v166_v54, 1  ;;  %v2333_v30 = vld [vmem:[%s2240_s11 + $0x3c8] sm:$0xff]  ;;  %v907_v33 = vld [vmem:[%s2240_s11 + $0x4b8] sm:$0xff] }
  0x1e   : > { %v1394_v36 = vld [vmem:[%s2240_s11 + $0x6c0] sm:$0x80]  ;;  %v4621_v46 = vrot.slane %v2278_v31, 5  ;;  %v1004_v51 = vsel %vm984_vm3, %v986_v35, %v4623_v40  ;;  %v1105_v61 = vadd.f32 %v987_v44, %v858_v49  ;;  %v4616_v11 = vrot.slane %v2302_v55, 1  ;;  %v901_v32 = vld [vmem:[%s2240_s11 + $0x488] sm:$0xe0] }
  0x1f   : > { %v2288_v42 = vld [vmem:[%s2240_s11 + $0x720] sm:$0xff]  ;;  %v1479_v47 = vrot.slane %v1394_v36, 6  ;;  %v1234_v56 = vsel %vm1231_vm4, %v1232_v41, %v1233_v45  ;;  %v1111_v62 = vadd.f32 %v1004_v51, %v864_v50  ;;  %v494_v17 = vrot.slane %v407_v60, 2  ;;  %v2342_v38 = vld [vmem:[%s2240_s11 + $0x4e8] sm:$0xff] }
  0x20   : > { %v2294_v48 = vld [vmem:[%s2240_s11 + $0x840] sm:$0xff]  ;;  %v1251_v57 = vsel %vm1231_vm4, %v1233_v45, %v4621_v46  ;;  %v4617_v58 = vrot.slane %v2288_v42, 6  ;;  %v1352_v12 = vadd.f32 %v1234_v56, %v1105_v61  ;;  %v249_v20 = vsel %vm243_vm0, %v247_v7, %v248_v9  ;;  %v1148_v45 = vld [vmem:[%s2240_s11 + $0x5a8] sm:$0xc0] }
  0x21   : > { %v1481_v63 = vsel %vm1478_vm5, %v1479_v47, %v1480_v52  ;;  %v4610_v0 = vrot.slane %v2294_v48, 7  ;;  %v1358_v13 = vadd.f32 %v1251_v57, %v1111_v62  ;;  %v265_v22 = vsel %vm243_vm0, %v248_v9, %v4616_v11  ;;  %v1154_v47 = vld [vmem:[%s2240_s11 + $0x5d8] sm:$0xff]  ;;  %v1395_v60 = vld [vmem:[%s2240_s11 + $0x6c8] sm:$0x80]  ;;  %v910_v11 = vld [vmem:[%s2240_s11 + $0x4d0] sm:$0xff] }
  0x22   : > { %v1498_v3 = vsel %vm1478_vm5, %v1480_v52, %v4617_v58  ;;  %v495_v23 = vrot.slane %v413_v1, 2  ;;  %v4613_v25 = vrot.slane %v2314_v2, 2  ;;  %v1599_v26 = vadd.f32 %v1481_v63, %v1352_v12  ;;  %v2620_v40 = vld [vmem:[%s2240_s11 + $0x1a8] sm:$0xff] }
  0x23   : > { %v1733_v15 = vsel %vm1725_vm6, %v1726_v59, %v4610_v0  ;;  %v1605_v27 = vadd.f32 %v1498_v3, %v1358_v13  ;;  %v365_v28 = vadd.f32 %v249_v20, %v118_v5  ;;  %v371_v29 = vadd.f32 %v265_v22, %v124_v6  ;;  %v1401_v3 = vld [vmem:[%s2240_s11 + $0x6f8] sm:$0xff]  ;;  %v2362_v5 = vld [vmem:[%s2240_s11 + $0x728] sm:$0xff]  ;;  %v161_v22 = vld [vmem:[%s2240_s11 + $0x130] sm:$0xfc] }
  0x24   : > { %v496_v34 = vsel %vm490_vm1, %v494_v17, %v495_v23  ;;  %v512_v35 = vsel %vm490_vm1, %v495_v23, %v4613_v25  ;;  %v741_v36 = vrot.slane %v654_v18, 3  ;;  %v742_v37 = vrot.slane %v660_v19, 3  ;;  %v1642_v13 = vld [vmem:[%s2240_s11 + $0x818] sm:$0xff]  ;;  %v657_v0 = vld [vmem:[%s2240_s11 + $0x380] sm:$0xf0] }
  0x25   : > { %v1846_v39 = vadd.f32 %v1726_v59, %v1599_v26  ;;  %v1852_v41 = vadd.f32 %v1733_v15, %v1605_v27  ;;  %v612_v43 = vadd.f32 %v496_v34, %v365_v28  ;;  %v618_v44 = vadd.f32 %v512_v35, %v371_v29  ;;  %v2353_v59 = vld [vmem:[%s2240_s11 + $0x608] sm:$0xff]  ;;  %v167_v29 = vld [vmem:[%s2240_s11 + $0x160] sm:$0xff] }
  0x26   : > { %v743_v49 = vsel %vm737_vm2, %v741_v36, %v742_v37  ;;  %v4612_v50 = vrot.slane %v2333_v30, 3  ;;  %v988_v51 = vrot.slane %v901_v32, 4  ;;  %v989_v52 = vrot.slane %v907_v33, 4  ;;  %v2375_v15 = vld [vmem:[%s2240_s11 + $0x848] sm:$0xff]  ;;  %v2386_v32 = vld [vmem:[%s2240_s11 + $0x190] sm:$0xff] }
  0x27   : > { %v1888_v53 = vmul.f32 0.125, %v1846_v39  ;;  %v2349_v54 = vmul.f32 0.125, %v1852_v41  ;;  %v859_v56 = vadd.f32 %v743_v49, %v612_v43  ;;  %v4609_v57 = vrot.slane %v2342_v38, 4  ;;  %v414_v39 = vld [vmem:[%s2240_s11 + $0x280] sm:$0xff]  ;;  %v2396_v41 = vld [vmem:[%s2240_s11 + $0x2b0] sm:$0xff] }
  0x28   : > { %v759_v61 = vsel %vm737_vm2, %v742_v37, %v4612_v50  ;;  %v990_v62 = vsel %vm984_vm3, %v988_v51, %v989_v52  ;;  %v1235_v63 = vrot.slane %v1148_v45, 5  ;;  %v1236_v1 = vrot.slane %v1154_v47, 5  ;;  %v408_v37 = vld [vmem:[%s2240_s11 + $0x250] sm:$0xf8] }
  0x29   : > { %v1972_v6 = vrot.slane %v1888_v53, 1  ;;  %v4593_v7 = vrot.slane %v2349_v54, 1  ;;  %v865_v9 = vadd.f32 %v759_v61, %v618_v44  ;;  %v1006_v12 = vsel %vm984_vm3, %v989_v52, %v4609_v57  ;;  %v655_v49 = vld [vmem:[%s2240_s11 + $0x370] sm:$0xf0] }
  0x2a   : > { %v1106_v17 = vadd.f32 %v990_v62, %v859_v56  ;;  %v1237_v18 = vsel %vm1231_vm4, %v1235_v63, %v1236_v1  ;;  %v4605_v19 = vrot.slane %v2353_v59, 5  ;;  %v1482_v20 = vrot.slane %v1395_v60, 6  ;;  %v119_v53 = vld [vmem:[%s2240_s11 + $0x10] sm:$0xfe]  ;;  %v125_v56 = vld [vmem:[%s2240_s11 + $0x40] sm:$0xff] }
  0x2b   : > { %v1974_v23 = vsel %vm243_vm0, %v1972_v6, %v4593_v7  ;;  %v1112_v26 = vadd.f32 %v1006_v12, %v865_v9  ;;  %v1483_v27 = vrot.slane %v1401_v3, 6  ;;  %v4604_v28 = vrot.slane %v2362_v5, 6  ;;  %v661_v6 = vld [vmem:[%s2240_s11 + $0x3a0] sm:$0xff]  ;;  %v2412_v9 = vld [vmem:[%s2240_s11 + $0x3d0] sm:$0xff] }
  0x2c   : > { %2092 = vst [vmem:[%s2367_s15] sm:$0xff] %v1974_v23  ;;  %v1253_v33 = vsel %vm1231_vm4, %v1236_v1, %v4605_v19  ;;  %v1353_v34 = vadd.f32 %v1237_v18, %v1106_v17  ;;  %v1727_v35 = vrot.slane %v1642_v13, 7  ;;  %v4597_v36 = vrot.slane %v2375_v15, 7  ;;  %v2529_v19 = vld [vmem:[%s2240_s11 + $0x858] sm:$0xff] }
  0x2d   : > { %v1359_v43 = vadd.f32 %v1253_v33, %v1112_v26  ;;  %v1484_v44 = vsel %vm1478_vm5, %v1482_v20, %v1483_v27  ;;  %v1500_v45 = vsel %vm1478_vm5, %v1483_v27, %v4604_v28  ;;  %v250_v47 = vrot.slane %v161_v22, 1  ;;  %v902_v20 = vld [vmem:[%s2240_s11 + $0x490] sm:$0xe0]  ;;  %v1644_v28 = vld [vmem:[%s2240_s11 + $0x828] sm:$0xff] }
  0x2e   : > { %v1600_v51 = vadd.f32 %v1484_v44, %v1353_v34  ;;  %v1735_v52 = vsel %vm1725_vm6, %v1727_v35, %v4597_v36  ;;  %v251_v60 = vrot.slane %v167_v29, 1  ;;  %v4603_v61 = vrot.slane %v2386_v32, 1  ;;  %v908_v29 = vld [vmem:[%s2240_s11 + $0x4c0] sm:$0xff] }
  0x2f   : > { %v1606_v62 = vadd.f32 %v1500_v45, %v1359_v43  ;;  %v497_v63 = vrot.slane %v408_v37, 2  ;;  %v498_v1 = vrot.slane %v414_v39, 2  ;;  %v4601_v3 = vrot.slane %v2396_v41, 2  ;;  %v2426_v39 = vld [vmem:[%s2240_s11 + $0x4f0] sm:$0xff] }
  0x30   : > { %v1847_v12 = vadd.f32 %v1727_v35, %v1600_v51  ;;  %v252_v13 = vsel %vm243_vm0, %v250_v47, %v251_v60  ;;  %v267_v17 = vsel %vm243_vm0, %v251_v60, %v4603_v61  ;;  %v744_v18 = vrot.slane %v655_v49, 3  ;;  %v1149_v49 = vld [vmem:[%s2240_s11 + $0x5b0] sm:$0xc0]  ;;  %v1155_v51 = vld [vmem:[%s2240_s11 + $0x5e0] sm:$0xff] }
  0x31   : > { %v1853_v22 = vadd.f32 %v1735_v52, %v1606_v62  ;;  %v366_v23 = vadd.f32 %v252_v13, %v119_v53  ;;  %v372_v26 = vadd.f32 %v267_v17, %v125_v56  ;;  %v499_v27 = vsel %vm490_vm1, %v497_v63, %v498_v1  ;;  %v2433_v52 = vld [vmem:[%s2240_s11 + $0x610] sm:$0xff]  ;;  %v1402_v17 = vld [vmem:[%s2240_s11 + $0x700] sm:$0xff] }
  0x32   : > { %v1889_v33 = vmul.f32 0.125, %v1847_v12  ;;  %v514_v34 = vsel %vm490_vm1, %v498_v1, %v4601_v3  ;;  %v745_v35 = vrot.slane %v661_v6, 3  ;;  %v4596_v37 = vrot.slane %v2412_v9, 3  ;;  %v1396_v63 = vld [vmem:[%s2240_s11 + $0x6d0] sm:$0x80] }
  0x33   : > { %v2428_v43 = vmul.f32 0.125, %v1853_v22  ;;  %v613_v44 = vadd.f32 %v499_v27, %v366_v23  ;;  %v619_v45 = vadd.f32 %v514_v34, %v372_v26  ;;  %v991_v47 = vrot.slane %v902_v20, 4  ;;  %v2446_v26 = vld [vmem:[%s2240_s11 + $0x730] sm:$0xff]  ;;  %v1643_v27 = vld [vmem:[%s2240_s11 + $0x820] sm:$0xff] }
  0x34   : > { %v1975_v53 = vrot.slane %v1889_v33, 1  ;;  %v746_v56 = vsel %vm737_vm2, %v744_v18, %v745_v35  ;;  %v761_v60 = vsel %vm737_vm2, %v745_v35, %v4596_v37  ;;  %v992_v62 = vrot.slane %v908_v29, 4  ;;  %v2450_v29 = vld [vmem:[%s2240_s11 + $0x850] sm:$0xff]  ;;  %v662_v37 = vld [vmem:[%s2240_s11 + $0x3a8] sm:$0xff] }
  0x35   : > { %v4592_v1 = vrot.slane %v2428_v43, 1  ;;  %v860_v6 = vadd.f32 %v746_v56, %v613_v44  ;;  %v866_v12 = vadd.f32 %v761_v60, %v619_v45  ;;  %v4595_v13 = vrot.slane %v2426_v39, 4  ;;  %v162_v45 = vld [vmem:[%s2240_s11 + $0x138] sm:$0xfc] }
  0x36   : > { %v993_v20 = vsel %vm984_vm3, %v991_v47, %v992_v62  ;;  %v1238_v22 = vrot.slane %v1149_v49, 5  ;;  %v1239_v18 = vrot.slane %v1155_v51, 5  ;;  %v4594_v23 = vrot.slane %v2433_v52, 5  ;;  %v168_v47 = vld [vmem:[%s2240_s11 + $0x168] sm:$0xff]  ;;  %v2466_v60 = vld [vmem:[%s2240_s11 + $0x198] sm:$0xff] }
  0x37   : > { %v1977_v33 = vsel %vm243_vm0, %v1975_v53, %v4592_v1  ;;  %v1008_v34 = vsel %vm984_vm3, %v992_v62, %v4595_v13  ;;  %v1107_v35 = vadd.f32 %v993_v20, %v860_v6  ;;  %v1485_v44 = vrot.slane %v1396_v63, 6  ;;  %v120_v1 = vld [vmem:[%s2240_s11 + $0x18] sm:$0xfe] }
  0x38   : > { %2093 = vst [vmem:[%s2367_s15 + $0x8] sm:$0xff] %v1977_v33  ;;  %v1113_v49 = vadd.f32 %v1008_v34, %v866_v12  ;;  %v1240_v51 = vsel %vm1231_vm4, %v1238_v22, %v1239_v18  ;;  %v1255_v53 = vsel %vm1231_vm4, %v1239_v18, %v4594_v23  ;;  %v1486_v56 = vrot.slane %v1402_v17, 6  ;;  %v409_v33 = vld [vmem:[%s2240_s11 + $0x258] sm:$0xf8]  ;;  %v415_v12 = vld [vmem:[%s2240_s11 + $0x288] sm:$0xff] }
  0x39   : > { %v1354_v62 = vadd.f32 %v1240_v51, %v1107_v35  ;;  %v4599_v6 = vrot.slane %v2446_v26, 6  ;;  %v1728_v63 = vrot.slane %v1643_v27, 7  ;;  %v4598_v20 = vrot.slane %v2450_v29, 7  ;;  %v2475_v17 = vld [vmem:[%s2240_s11 + $0x2b8] sm:$0xff] }
  0x3a   : > { %v1360_v34 = vadd.f32 %v1255_v53, %v1113_v49  ;;  %v1487_v22 = vsel %vm1478_vm5, %v1485_v44, %v1486_v56  ;;  %v253_v7 = vrot.slane %v162_v45, 1  ;;  %v254_v18 = vrot.slane %v168_v47, 1  ;;  %v126_v49 = vld [vmem:[%s2240_s11 + $0x48] sm:$0xff]  ;;  %v656_v44 = vld [vmem:[%s2240_s11 + $0x378] sm:$0xf0] }
  0x3b   : > { %v1502_v35 = vsel %vm1478_vm5, %v1486_v56, %v4599_v6  ;;  %v1601_v27 = vadd.f32 %v1487_v22, %v1354_v62  ;;  %v1737_v51 = vsel %vm1725_vm6, %v1728_v63, %v4598_v20  ;;  %v4600_v53 = vrot.slane %v2466_v60, 1  ;;  %v2493_v20 = vld [vmem:[%s2240_s11 + $0x3d8] sm:$0xff] }
  0x3c   : > { %v1607_v45 = vadd.f32 %v1502_v35, %v1360_v34  ;;  %v255_v47 = vsel %vm243_vm0, %v253_v7, %v254_v18  ;;  %v500_v23 = vrot.slane %v409_v33, 2  ;;  %v501_v13 = vrot.slane %v415_v12, 2  ;;  %v903_v6 = vld [vmem:[%s2240_s11 + $0x498] sm:$0xe0]  ;;  %v909_v12 = vld [vmem:[%s2240_s11 + $0x4c8] sm:$0xff] }
  0x3d   : > { %v1848_v36 = vadd.f32 %v1728_v63, %v1601_v27  ;;  %v269_v56 = vsel %vm243_vm0, %v254_v18, %v4600_v53  ;;  %v367_v62 = vadd.f32 %v255_v47, %v120_v1  ;;  %v4602_v22 = vrot.slane %v2475_v17, 2  ;;  %v2499_v63 = vld [vmem:[%s2240_s11 + $0x4f8] sm:$0xff] }
  0x3e   : > { %v1854_v34 = vadd.f32 %v1737_v51, %v1607_v45  ;;  %v373_v35 = vadd.f32 %v269_v56, %v126_v49  ;;  %v502_v7 = vsel %vm490_vm1, %v500_v23, %v501_v13  ;;  %v747_v33 = vrot.slane %v656_v44, 3  ;;  %v1150_v53 = vld [vmem:[%s2240_s11 + $0x5b8] sm:$0xc0]  ;;  %v1156_v44 = vld [vmem:[%s2240_s11 + $0x5e8] sm:$0xff] }
  0x3f   : > { %v1890_v27 = vmul.f32 0.125, %v1848_v36  ;;  %v516_v1 = vsel %vm490_vm1, %v501_v13, %v4602_v22  ;;  %v614_v18 = vadd.f32 %v502_v7, %v367_v62  ;;  %v748_v47 = vrot.slane %v662_v37, 3  ;;  %v2512_v62 = vld [vmem:[%s2240_s11 + $0x618] sm:$0xff] }
  0x40   : > { %v2505_v3 = vmul.f32 0.125, %v1854_v34  ;;  %v620_v51 = vadd.f32 %v516_v1, %v373_v35  ;;  %v4607_v23 = vrot.slane %v2493_v20, 3  ;;  %v994_v49 = vrot.slane %v903_v6, 4  ;;  %v1397_v37 = vld [vmem:[%s2240_s11 + $0x6d8] sm:$0x80] }
  0x41   : > { %v1978_v45 = vrot.slane %v1890_v27, 1  ;;  %v749_v36 = vsel %vm737_vm2, %v747_v33, %v748_v47  ;;  %v995_v56 = vrot.slane %v909_v12, 4  ;;  %v4606_v13 = vrot.slane %v2499_v63, 4  ;;  %v1403_v27 = vld [vmem:[%s2240_s11 + $0x708] sm:$0xff]  ;;  %v2521_v1 = vld [vmem:[%s2240_s11 + $0x738] sm:$0xff] }
  0x42   : > { %v4608_v34 = vrot.slane %v2505_v3, 1  ;;  %v763_v35 = vsel %vm737_vm2, %v748_v47, %v4607_v23  ;;  %v861_v6 = vadd.f32 %v749_v36, %v614_v18  ;;  %v1241_v7 = vrot.slane %v1150_v53, 5  ;;  %v2541_v23 = vld [vmem:[%s2240_s11 + $0x1a0] sm:$0xff] }
  0x43   : > { %v867_v33 = vadd.f32 %v763_v35, %v620_v51  ;;  %v996_v12 = vsel %vm984_vm3, %v994_v49, %v995_v56  ;;  %v1010_v22 = vsel %vm984_vm3, %v995_v56, %v4606_v13  ;;  %v1242_v61 = vrot.slane %v1156_v44, 5  ;;  %v163_v49 = vld [vmem:[%s2240_s11 + $0x140] sm:$0xfc]  ;;  %v169_v13 = vld [vmem:[%s2240_s11 + $0x170] sm:$0xff] }
  0x44   : > { %v1980_v53 = vsel %vm243_vm0, %v1978_v45, %v4608_v34  ;;  %v1108_v18 = vadd.f32 %v996_v12, %v861_v6  ;;  %v4611_v47 = vrot.slane %v2512_v62, 5  ;;  %v1488_v51 = vrot.slane %v1397_v37, 6 }
  0x45   : > { %2094 = vst [vmem:[%s2367_s15 + $0x10] sm:$0xff] %v1980_v53  ;;  %v1114_v36 = vadd.f32 %v1010_v22, %v867_v33  ;;  %v1243_v56 = vsel %vm1231_vm4, %v1241_v7, %v1242_v61  ;;  %v1489_v44 = vrot.slane %v1403_v27, 6  ;;  %v4615_v35 = vrot.slane %v2521_v1, 6  ;;  %v410_v22 = vld [vmem:[%s2240_s11 + $0x260] sm:$0xf8]  ;;  %v416_v33 = vld [vmem:[%s2240_s11 + $0x290] sm:$0xff] }
  0x46   : > { %v1257_v45 = vsel %vm1231_vm4, %v1242_v61, %v4611_v47  ;;  %v1355_v6 = vadd.f32 %v1243_v56, %v1108_v18  ;;  %v1729_v37 = vrot.slane %v1644_v28, 7  ;;  %v4614_v12 = vrot.slane %v2529_v19, 7  ;;  %v2550_v7 = vld [vmem:[%s2240_s11 + $0x2c0] sm:$0xff]  ;;  %v127_v56 = vld [vmem:[%s2240_s11 + $0x50] sm:$0xff] }
  0x47   : > { %v1361_v27 = vadd.f32 %v1257_v45, %v1114_v36  ;;  %v1490_v53 = vsel %vm1478_vm5, %v1488_v51, %v1489_v44  ;;  %v1504_v34 = vsel %vm1478_vm5, %v1489_v44, %v4615_v35  ;;  %v256_v57 = vrot.slane %v163_v49, 1  ;;  %v121_v18 = vld [vmem:[%s2240_s11 + $0x20] sm:$0xfe]  ;;  %v663_v44 = vld [vmem:[%s2240_s11 + $0x3b0] sm:$0xff] }
  0x48   : > { %v1602_v61 = vadd.f32 %v1490_v53, %v1355_v6  ;;  %v1739_v28 = vsel %vm1725_vm6, %v1729_v37, %v4614_v12  ;;  %v257_v47 = vrot.slane %v169_v13, 1  ;;  %v4619_v36 = vrot.slane %v2541_v23, 1  ;;  %v2566_v49 = vld [vmem:[%s2240_s11 + $0x3e0] sm:$0xff] }
  0x49   : > { %v1608_v45 = vadd.f32 %v1504_v34, %v1361_v27  ;;  %v503_v51 = vrot.slane %v410_v22, 2  ;;  %v504_v50 = vrot.slane %v416_v33, 2  ;;  %v4618_v25 = vrot.slane %v2550_v7, 2  ;;  %v904_v35 = vld [vmem:[%s2240_s11 + $0x4a0] sm:$0xe0] }
  0x4a   : > { %v1849_v6 = vadd.f32 %v1729_v37, %v1602_v61  ;;  %v258_v53 = vsel %vm243_vm0, %v256_v57, %v257_v47  ;;  %v271_v12 = vsel %vm243_vm0, %v257_v47, %v4619_v36  ;;  %v750_v13 = vrot.slane %v657_v0, 3  ;;  %v2580_v0 = vld [vmem:[%s2240_s11 + $0x500] sm:$0xff] }
  0x4b   : > { %v1855_v34 = vadd.f32 %v1739_v28, %v1608_v45  ;;  %v368_v22 = vadd.f32 %v258_v53, %v121_v18  ;;  %v374_v33 = vadd.f32 %v271_v12, %v127_v56  ;;  %v505_v27 = vsel %vm490_vm1, %v503_v51, %v504_v50  ;;  %v1151_v56 = vld [vmem:[%s2240_s11 + $0x5c0] sm:$0xc0]  ;;  %v1157_v45 = vld [vmem:[%s2240_s11 + $0x5f0] sm:$0xff] }
  0x4c   : > { %v1891_v58 = vmul.f32 0.125, %v1849_v6  ;;  %v518_v57 = vsel %vm490_vm1, %v504_v50, %v4618_v25  ;;  %v751_v37 = vrot.slane %v663_v44, 3  ;;  %v4620_v47 = vrot.slane %v2566_v49, 3  ;;  %v2587_v51 = vld [vmem:[%s2240_s11 + $0x620] sm:$0xff] }
  0x4d   : > { %v2582_v61 = vmul.f32 0.125, %v1855_v34  ;;  %v615_v28 = vadd.f32 %v505_v27, %v368_v22  ;;  %v621_v18 = vadd.f32 %v518_v57, %v374_v33  ;;  %v997_v12 = vrot.slane %v904_v35, 4  ;;  %v1398_v34 = vld [vmem:[%s2240_s11 + $0x6e0] sm:$0x80]  ;;  %v1404_v57 = vld [vmem:[%s2240_s11 + $0x710] sm:$0xff] }
  0x4e   : > { %v1981_v6 = vrot.slane %v1891_v58, 1  ;;  %v752_v50 = vsel %vm737_vm2, %v750_v13, %v751_v37  ;;  %v765_v44 = vsel %vm737_vm2, %v751_v37, %v4620_v47  ;;  %v998_v53 = vrot.slane %v910_v11, 4  ;;  %v2600_v37 = vld [vmem:[%s2240_s11 + $0x740] sm:$0xff]  ;;  %v1645_v11 = vld [vmem:[%s2240_s11 + $0x830] sm:$0xff] }
  0x4f   : > { %4781 = vst [vmem:[#allocation2_spill] sm:$0xff] %v2582_v61  ;;  %v4622_v22 = vrot.slane %v2582_v61, 1  ;;  %v862_v35 = vadd.f32 %v752_v50, %v615_v28  ;;  %v868_v33 = vadd.f32 %v765_v44, %v621_v18  ;;  %v4624_v27 = vrot.slane %v2580_v0, 4  ;;  %v2604_v47 = vld [vmem:[%s2240_s11 + $0x860] sm:$0xff]  ;;  %v170_v50 = vld [vmem:[%s2240_s11 + $0x178] sm:$0xff] }
  0x50   : > { %v999_v58 = vsel %vm984_vm3, %v997_v12, %v998_v53  ;;  %v1244_v25 = vrot.slane %v1151_v56, 5  ;;  %v1245_v13 = vrot.slane %v1157_v45, 5  ;;  %v4626_v36 = vrot.slane %v2587_v51, 5  ;;  %4782 = vst [vmem:[#allocation3_spill] sm:$0xff] %v2604_v47  ;;  %v164_v45 = vld [vmem:[%s2240_s11 + $0x148] sm:$0xfc] }
  0x51   : > { %v1983_v28 = vsel %vm243_vm0, %v1981_v6, %v4622_v22  ;;  %v1012_v18 = vsel %vm984_vm3, %v998_v53, %v4624_v27  ;;  %v1109_v12 = vadd.f32 %v999_v58, %v862_v35  ;;  %v1491_v56 = vrot.slane %v1398_v34, 6  ;;  %v122_v27 = vld [vmem:[%s2240_s11 + $0x28] sm:$0xfe] }
  0x52   : > { %2095 = vst [vmem:[%s2367_s15 + $0x18] sm:$0xff] %v1983_v28  ;;  %v1115_v44 = vadd.f32 %v1012_v18, %v868_v33  ;;  %v1246_v46 = vsel %vm1231_vm4, %v1244_v25, %v1245_v13  ;;  %v1259_v6 = vsel %vm1231_vm4, %v1245_v13, %v4626_v36  ;;  %v1492_v22 = vrot.slane %v1404_v57, 6  ;;  %v411_v28 = vld [vmem:[%s2240_s11 + $0x268] sm:$0xf8]  ;;  %v417_v33 = vld [vmem:[%s2240_s11 + $0x298] sm:$0xff] }
  0x53   : > { %v1356_v53 = vadd.f32 %v1246_v46, %v1109_v12  ;;  %v4631_v35 = vrot.slane %v2600_v37, 6  ;;  %v1730_v34 = vrot.slane %v1645_v11, 7  ;;  %v4630_v58 = vrot.slane %v2604_v47, 7  ;;  %v2629_v57 = vld [vmem:[%s2240_s11 + $0x2c8] sm:$0xff] }
  0x54   : > { %v1362_v18 = vadd.f32 %v1259_v6, %v1115_v44  ;;  %v1493_v25 = vsel %vm1478_vm5, %v1491_v56, %v1492_v22  ;;  %v259_v21 = vrot.slane %v164_v45, 1  ;;  %v260_v13 = vrot.slane %v170_v50, 1  ;;  %4783 = vst [vmem:[#allocation4_spill] sm:$0xff] %v2629_v57  ;;  %v128_v44 = vld [vmem:[%s2240_s11 + $0x58] sm:$0xff]  ;;  %v658_v56 = vld [vmem:[%s2240_s11 + $0x388] sm:$0xf0] }
  0x55   : > { %v1506_v46 = vsel %vm1478_vm5, %v1492_v22, %v4631_v35  ;;  %v1603_v11 = vadd.f32 %v1493_v25, %v1356_v53  ;;  %v1741_v12 = vsel %vm1725_vm6, %v1730_v34, %v4630_v58  ;;  %v4632_v6 = vrot.slane %v2620_v40, 1  ;;  %v2647_v58 = vld [vmem:[%s2240_s11 + $0x3e8] sm:$0xff] }
  0x56   : > { %v1609_v45 = vadd.f32 %v1506_v46, %v1362_v18  ;;  %v261_v50 = vsel %vm243_vm0, %v259_v21, %v260_v13  ;;  %v506_v36 = vrot.slane %v411_v28, 2  ;;  %v507_v14 = vrot.slane %v417_v33, 2  ;;  %4784 = vst [vmem:[#allocation5_spill] sm:$0xff] %v2647_v58  ;;  %v905_v35 = vld [vmem:[%s2240_s11 + $0x4a8] sm:$0xe0]  ;;  %v911_v33 = vld [vmem:[%s2240_s11 + $0x4d8] sm:$0xff] }
  0x57   : > { %v1850_v61 = vadd.f32 %v1730_v34, %v1603_v11  ;;  %v273_v22 = vsel %vm243_vm0, %v260_v13, %v4632_v6  ;;  %v369_v53 = vadd.f32 %v261_v50, %v122_v27  ;;  %v4634_v25 = vrot.slane %v2629_v57, 2  ;;  %v2653_v34 = vld [vmem:[%s2240_s11 + $0x508] sm:$0xff] }
  0x58   : > { %v1856_v18 = vadd.f32 %v1741_v12, %v1609_v45  ;;  %v375_v46 = vadd.f32 %v273_v22, %v128_v44  ;;  %v508_v21 = vsel %vm490_vm1, %v506_v36, %v507_v14  ;;  %v753_v28 = vrot.slane %v658_v56, 3  ;;  %v1152_v6 = vld [vmem:[%s2240_s11 + $0x5c8] sm:$0xc0]  ;;  %v1158_v56 = vld [vmem:[%s2240_s11 + $0x5f8] sm:$0xff] }
  0x59   : > { %v1892_v11 = vmul.f32 0.125, %v1850_v61  ;;  %v520_v27 = vsel %vm490_vm1, %v507_v14, %v4634_v25  ;;  %v616_v13 = vadd.f32 %v508_v21, %v369_v53  ;;  %v754_v50 = vrot.slane %v664_v8, 3  ;;  %v2666_v53 = vld [vmem:[%s2240_s11 + $0x628] sm:$0xff] }
  0x5a   : > { %v2659_v47 = vmul.f32 0.125, %v1856_v18  ;;  %v622_v12 = vadd.f32 %v520_v27, %v375_v46  ;;  %v4638_v36 = vrot.slane %v2647_v58, 3  ;;  %v1000_v44 = vrot.slane %v905_v35, 4  ;;  %v1399_v8 = vld [vmem:[%s2240_s11 + $0x6e8] sm:$0x80]  ;;  %v1646_v58 = vld [vmem:[%s2240_s11 + $0x838] sm:$0xff] }
  0x5b   : > { %v1984_v45 = vrot.slane %v1892_v11, 1  ;;  %v755_v61 = vsel %vm737_vm2, %v753_v28, %v754_v50  ;;  %v1001_v22 = vrot.slane %v911_v33, 4  ;;  %v4637_v14 = vrot.slane %v2653_v34, 4  ;;  %v1405_v11 = vld [vmem:[%s2240_s11 + $0x718] sm:$0xff]  ;;  %v2675_v27 = vld [vmem:[%s2240_s11 + $0x748] sm:$0xff] }
  0x5c   : > { %4785 = vst [vmem:[#allocation6_spill] sm:$0xff] %v2659_v47  ;;  %v767_v46 = vsel %vm737_vm2, %v754_v50, %v4638_v36  ;;  %v863_v35 = vadd.f32 %v755_v61, %v616_v13  ;;  %v1247_v21 = vrot.slane %v1152_v6, 5  ;;  %v1248_v18 = vrot.slane %v1158_v56, 5  ;;  %v2683_v57 = vld [vmem:[%s2240_s11 + $0x868] sm:$0xff]  ;;  %v2696_v36 = vld [vmem:[%s2240_s11 + $0x2d0] sm:$0xff] }
  0x5d   : > { %v869_v28 = vadd.f32 %v767_v46, %v622_v12  ;;  %v1002_v33 = vsel %vm984_vm3, %v1000_v44, %v1001_v22  ;;  %v1014_v25 = vsel %vm984_vm3, %v1001_v22, %v4637_v14  ;;  %4786 = vst [vmem:[#allocation7_spill] sm:$0xff] %v2683_v57  ;;  %v4787_v50 = vrot.slane %v2659_v47, 1  ;;  %v2690_v44 = vld [vmem:[%s2240_s11 + $0x1b0] sm:$0xff]  ;;  %4788 = vst [vmem:[#allocation8_spill] sm:$0xff] %v2696_v36 }
  0x5e   : > { %v1110_v13 = vadd.f32 %v1002_v33, %v863_v35  ;;  %v4641_v12 = vrot.slane %v2666_v53, 5  ;;  %v1494_v61 = vrot.slane %v1399_v8, 6  ;;  %v1249_v56 = vsel %vm1231_vm4, %v1247_v21, %v1248_v18  ;;  %v2699_v47 = vld [vmem:[%s2240_s11 + $0x3f0] sm:$0xff] }
  0x5f   : > { %v1986_v6 = vsel %vm243_vm0, %v1984_v45, %v4787_v50  ;;  %v1116_v46 = vadd.f32 %v1014_v25, %v869_v28  ;;  %v1495_v22 = vrot.slane %v1405_v11, 6  ;;  %v4640_v14 = vrot.slane %v2675_v27, 6  ;;  %v2706_v50 = vld [vmem:[%s2240_s11 + $0x510] sm:$0xff] }
  0x60   : > { %2096 = vst [vmem:[%s2367_s15 + $0x20] sm:$0xff] %v1986_v6  ;;  %v1261_v45 = vsel %vm1231_vm4, %v1248_v18, %v4641_v12  ;;  %v1357_v8 = vadd.f32 %v1249_v56, %v1110_v13  ;;  %v1731_v35 = vrot.slane %v1646_v58, 7  ;;  %v4642_v33 = vrot.slane %v2683_v57, 7  ;;  %v2709_v25 = vld [vmem:[%s2240_s11 + $0x630] sm:$0xff]  ;;  %v129_v6 = vld [vmem:[%s2240_s11 + $0x60] sm:$0xff] }
  0x61   : > { %4789 = vst [vmem:[#allocation9_spill] sm:$0xff] %v2709_v25  ;;  %v1363_v21 = vadd.f32 %v1261_v45, %v1116_v46  ;;  %v1496_v11 = vsel %vm1478_vm5, %v1494_v61, %v1495_v22  ;;  %v1508_v28 = vsel %vm1478_vm5, %v1495_v22, %v4640_v14  ;;  %v4644_v18 = vrot.slane %v2690_v44, 1  ;;  %v2723_v61 = vld [vmem:[%s2240_s11 + $0x750] sm:$0xff] }
  0x62   : > { %v1604_v58 = vadd.f32 %v1496_v11, %v1357_v8  ;;  %v1743_v13 = vsel %vm1725_vm6, %v1731_v35, %v4642_v33  ;;  %v4790_v22 = vrot.slane %v2247_v4, 1  ;;  %v4646_v12 = vrot.slane %v2706_v50, 4  ;;  %v2733_v11 = vld [vmem:[%s2240_s11 + $0x1b8] sm:$0xff]  ;;  %v2741_v57 = vld [vmem:[%s2240_s11 + $0x870] sm:$0xff] }
  0x63   : > { %v1610_v45 = vadd.f32 %v1508_v28, %v1363_v21  ;;  %v4791_v46 = vrot.slane %v2696_v36, 2  ;;  %v4792_v21 = vrot.slane %v2253_v10, 2  ;;  %v2744_v4 = vld [vmem:[%s2240_s11 + $0x2d8] sm:$0xff]  ;;  %v4794_v8 = vrot.slane %v2699_v47, 3 }
  0x64   : > { %v275_v14 = vsel %vm243_vm0, %v4790_v22, %v4644_v18  ;;  %v1851_v33 = vadd.f32 %v1731_v35, %v1604_v58  ;;  %v2747_v22 = vld [vmem:[%s2240_s11 + $0x3f8] sm:$0xff]  ;;  %v4795_v35 = vrot.slane %v2259_v16, 3  ;;  %v4796_v10 = vrot.slane %v2269_v24, 4  ;;  %v130_v16 = vld [vmem:[%s2240_s11 + $0x68] sm:$0xff] }
  0x65   : > { %v376_v56 = vadd.f32 %v275_v14, %v129_v6  ;;  %v522_v28 = vsel %vm490_vm1, %v4792_v21, %v4791_v46  ;;  %4793 = vst [vmem:[#allocation10_spill] sm:$0xff] %v2747_v22  ;;  %v1857_v18 = vadd.f32 %v1743_v13, %v1610_v45  ;;  %v4649_v58 = vrot.slane %v2723_v61, 6 }
  0x66   : > { %v769_v14 = vsel %vm737_vm2, %v4795_v35, %v4794_v8  ;;  %v1016_v6 = vsel %vm984_vm3, %v4796_v10, %v4646_v12  ;;  %v1893_v46 = vmul.f32 0.125, %v1851_v33  ;;  %v4797_v36 = vrot.slane %v2709_v25, 5  ;;  %v2768_v35 = vld [vmem:[%s2240_s11 + $0x518] sm:$0xff]  ;;  %v2792_v33 = vld [vmem:[%s2240_s11 + $0x1c0] sm:$0xff] }
  0x67   : > { %v623_v21 = vadd.f32 %v522_v28, %v376_v56  ;;  %v4798_v13 = vrot.slane %v2278_v31, 5  ;;  %v4648_v8 = vrot.slane %v2733_v11, 1  ;;  %v2770_v24 = vmul.f32 0.125, %v1857_v18  ;;  %v2776_v28 = vld [vmem:[%s2240_s11 + $0x638] sm:$0xff] }
  0x68   : > { %v2779_v31 = vld [vmem:[%s2240_s11 + $0x758] sm:$0xff]  ;;  %v4801_v12 = vrot.slane %v2288_v42, 6  ;;  %v4802_v10 = vrot.slane %v2302_v55, 1  ;;  %v4804_v42 = vrot.slane %v2314_v2, 2  ;;  %v4806_v55 = vrot.slane %v2333_v30, 3 }
  0x69   : > { %v1263_v45 = vsel %vm1231_vm4, %v4798_v13, %v4797_v36  ;;  %4799 = vst [vmem:[#allocation11_spill] sm:$0xff] %v2770_v24  ;;  %4800 = vst [vmem:[#allocation12_spill] sm:$0xff] %v2779_v31  ;;  %v1987_v36 = vrot.slane %v1893_v46, 1  ;;  %v870_v13 = vadd.f32 %v769_v14, %v623_v21  ;;  %v4803_v46 = vrot.slane %v2744_v4, 2 }
  0x6a   : > { %v1510_v18 = vsel %vm1478_vm5, %v4801_v12, %v4649_v58  ;;  %v277_v56 = vsel %vm243_vm0, %v4802_v10, %v4648_v8  ;;  %v4805_v21 = vrot.slane %v2747_v22, 3  ;;  %v2806_v8 = vld [vmem:[%s2240_s11 + $0x878] sm:$0xff]  ;;  %v4808_v30 = vrot.slane %v2741_v57, 7  ;;  %v2828_v22 = vld [vmem:[%s2240_s11 + $0x520] sm:$0xff] }
  0x6b   : > { %v377_v14 = vadd.f32 %v277_v56, %v130_v16  ;;  %v524_v12 = vsel %vm490_vm1, %v4804_v42, %v4803_v46  ;;  %v1117_v58 = vadd.f32 %v1016_v6, %v870_v13  ;;  %v2812_v56 = vld [vmem:[%s2240_s11 + $0x2e0] sm:$0xff]  ;;  %v4807_v46 = vrot.slane %v2770_v24, 1 }
  0x6c   : > { %v771_v10 = vsel %vm737_vm2, %v4806_v55, %v4805_v21  ;;  %v4809_v21 = vrot.slane %v2294_v48, 7  ;;  %v131_v55 = vld [vmem:[%s2240_s11 + $0x70] sm:$0xff]  ;;  %v4653_v25 = vrot.slane %v2792_v33, 1  ;;  %v2825_v16 = vld [vmem:[%s2240_s11 + $0x400] sm:$0xff]  ;;  %v4810_v24 = vrot.slane %v2768_v35, 4 }
  0x6d   : > { %v1989_v42 = vsel %vm243_vm0, %v1987_v36, %v4807_v46  ;;  %v624_v13 = vadd.f32 %v524_v12, %v377_v14  ;;  %v1364_v2 = vadd.f32 %v1263_v45, %v1117_v58  ;;  %v4811_v36 = vrot.slane %v2342_v38, 4 }
  0x6e   : > { %v1745_v6 = vsel %vm1725_vm6, %v4809_v21, %v4808_v30  ;;  %2097 = vst [vmem:[%s2367_s15 + $0x28] sm:$0xff] %v1989_v42  ;;  %v4812_v48 = vrot.slane %v2776_v28, 5  ;;  %v4813_v14 = vrot.slane %v2353_v59, 5  ;;  %v2843_v21 = vld [vmem:[%s2240_s11 + $0x640] sm:$0xff]  ;;  %v4814_v45 = vrot.slane %v2779_v31, 6 }
  0x6f   : > { %v1018_v46 = vsel %vm984_vm3, %v4811_v36, %v4810_v24  ;;  %v2846_v42 = vld [vmem:[%s2240_s11 + $0x760] sm:$0xff]  ;;  %v871_v58 = vadd.f32 %v771_v10, %v624_v13  ;;  %v4815_v38 = vrot.slane %v2362_v5, 6  ;;  %v4816_v59 = vrot.slane %v2386_v32, 1 }
  0x70   : > { %v1265_v12 = vsel %vm1231_vm4, %v4813_v14, %v4812_v48  ;;  %v4654_v48 = vrot.slane %v2812_v56, 2  ;;  %v1611_v14 = vadd.f32 %v1510_v18, %v1364_v2  ;;  %v4657_v10 = vrot.slane %v2825_v16, 3  ;;  %v2862_v31 = vld [vmem:[%s2240_s11 + $0x880] sm:$0xff]  ;;  %v2872_v2 = vld [vmem:[%s2240_s11 + $0x1c8] sm:$0xff] }
  0x71   : > { %v1512_v24 = vsel %vm1478_vm5, %v4815_v38, %v4814_v45  ;;  %v279_v36 = vsel %vm243_vm0, %v4816_v59, %v4653_v25  ;;  %v4655_v13 = vrot.slane %v2828_v22, 4  ;;  %v1118_v5 = vadd.f32 %v1018_v46, %v871_v58  ;;  %v2891_v18 = vld [vmem:[%s2240_s11 + $0x528] sm:$0xff] }
  0x72   : > { %v378_v30 = vadd.f32 %v279_v36, %v131_v55  ;;  %v4817_v45 = vrot.slane %v2396_v41, 2  ;;  %v4656_v38 = vrot.slane %v2843_v21, 5  ;;  %v2875_v55 = vld [vmem:[%s2240_s11 + $0x2e8] sm:$0xff]  ;;  %v1858_v59 = vadd.f32 %v1745_v6, %v1611_v14 }
  0x73   : > { %v4818_v36 = vrot.slane %v2806_v8, 7  ;;  %v4819_v46 = vrot.slane %v2375_v15, 7  ;;  %v4820_v41 = vrot.slane %v2412_v9, 3  ;;  %v1365_v6 = vadd.f32 %v1265_v12, %v1118_v5 }
  0x74   : > { %v526_v32 = vsel %vm490_vm1, %v4817_v45, %v4654_v48  ;;  %v2888_v48 = vld [vmem:[%s2240_s11 + $0x408] sm:$0xff]  ;;  %v4821_v15 = vrot.slane %v2426_v39, 4  ;;  %v4658_v12 = vrot.slane %v2872_v2, 1  ;;  %v4660_v5 = vrot.slane %v2875_v55, 2 }
  0x75   : > { %v1747_v58 = vsel %vm1725_vm6, %v4819_v46, %v4818_v36  ;;  %v625_v25 = vadd.f32 %v526_v32, %v378_v30  ;;  %v773_v45 = vsel %vm737_vm2, %v4820_v41, %v4657_v10  ;;  %v4822_v30 = vrot.slane %v2433_v52, 5  ;;  %v132_v41 = vld [vmem:[%s2240_s11 + $0x78] sm:$0xff] }
  0x76   : > { %v1020_v14 = vsel %vm984_vm3, %v4821_v15, %v4655_v13  ;;  %v4661_v32 = vrot.slane %v2862_v31, 7  ;;  %v2904_v36 = vmul.f32 0.125, %v1858_v59  ;;  %v1612_v39 = vadd.f32 %v1512_v24, %v1365_v6 }
  0x77   : > { %v1267_v9 = vsel %vm1231_vm4, %v4822_v30, %v4656_v38  ;;  %v872_v46 = vadd.f32 %v773_v45, %v625_v25  ;;  %v4823_v15 = vrot.slane %v2846_v42, 6  ;;  %v4824_v13 = vrot.slane %v2446_v26, 6  ;;  %v2917_v38 = vld [vmem:[%s2240_s11 + $0x648] sm:$0xff] }
  0x78   : > { %v4659_v30 = vrot.slane %v2888_v48, 3  ;;  %v2920_v25 = vld [vmem:[%s2240_s11 + $0x768] sm:$0xff]  ;;  %v4663_v45 = vrot.slane %v2904_v36, 1  ;;  %v4825_v24 = vrot.slane %v2466_v60, 1  ;;  %v1859_v59 = vadd.f32 %v1747_v58, %v1612_v39 }
  0x79   : > { %v1514_v52 = vsel %vm1478_vm5, %v4824_v13, %v4823_v15  ;;  %v1119_v10 = vadd.f32 %v1020_v14, %v872_v46  ;;  %v4826_v13 = vrot.slane %v2475_v17, 2  ;;  %v2934_v15 = vld [vmem:[%s2240_s11 + $0x1d0] sm:$0xff]  ;;  %v4827_v14 = vrot.slane %v2450_v29, 7 }
  0x7a   : > { %v281_v26 = vsel %vm243_vm0, %v4825_v24, %v4658_v12  ;;  %v4828_v24 = vrot.slane %v2493_v20, 3  ;;  %v2947_v12 = vld [vmem:[%s2240_s11 + $0x888] sm:$0xff]  ;;  %v4829_v58 = vrot.slane %v2349_v54, 1  ;;  %v2960_v20 = vmul.f32 0.125, %v1859_v59 }
  0x7b   : > { %v528_v6 = vsel %vm490_vm1, %v4826_v13, %v4660_v5  ;;  %v1749_v46 = vsel %vm1725_vm6, %v4827_v14, %v4661_v32  ;;  %v379_v60 = vadd.f32 %v281_v26, %v132_v41  ;;  %v2950_v13 = vld [vmem:[%s2240_s11 + $0x2f0] sm:$0xff]  ;;  %v1366_v39 = vadd.f32 %v1267_v9, %v1119_v10  ;;  %v133_v5 = vld [vmem:[%s2240_s11 + $0x80] sm:$0xff] }
  0x7c   : > { %v775_v17 = vsel %vm737_vm2, %v4828_v24, %v4659_v30  ;;  %v1991_v29 = vsel %vm243_vm0, %v4829_v58, %v4663_v45  ;;  %v4662_v41 = vrot.slane %v2917_v38, 5  ;;  %v4669_v26 = vrot.slane %v2920_v25, 6  ;;  %v2970_v32 = vld [vmem:[%s2240_s11 + $0x410] sm:$0xff] }
  0x7d   : > { %2098 = vst [vmem:[%s2367_s15 + $0x30] sm:$0xff] %v1991_v29  ;;  %v626_v14 = vadd.f32 %v528_v6, %v379_v60  ;;  %v4830_v24 = vrot.slane %v2891_v18, 4  ;;  %v4831_v30 = vrot.slane %v2499_v63, 4  ;;  %v4667_v58 = vrot.slane %v2934_v15, 1  ;;  %v2980_v63 = vld [vmem:[%s2240_s11 + $0x530] sm:$0xff] }
  0x7e   : > { %v1613_v10 = vadd.f32 %v1514_v52, %v1366_v39  ;;  %v4832_v9 = vrot.slane %v2512_v62, 5  ;;  %v4664_v60 = vrot.slane %v2950_v13, 2  ;;  %v4665_v29 = vrot.slane %v2960_v20, 1 }
  0x7f   : > { %v1022_v54 = vsel %vm984_vm3, %v4831_v30, %v4830_v24  ;;  %v2983_v30 = vld [vmem:[%s2240_s11 + $0x650] sm:$0xff]  ;;  %v873_v24 = vadd.f32 %v775_v17, %v626_v14  ;;  %v4833_v52 = vrot.slane %v2521_v1, 6  ;;  %v4834_v39 = vrot.slane %v2541_v23, 1 }
  0x80   : > { %v1269_v59 = vsel %vm1231_vm4, %v4832_v9, %v4662_v41  ;;  %v2997_v41 = vld [vmem:[%s2240_s11 + $0x770] sm:$0xff]  ;;  %v1860_v45 = vadd.f32 %v1749_v46, %v1613_v10  ;;  %v4835_v17 = vrot.slane %v2550_v7, 2  ;;  %v4666_v14 = vrot.slane %v2970_v32, 3 }
  0x81   : > { %v1516_v62 = vsel %vm1478_vm5, %v4833_v52, %v4669_v26  ;;  %v283_v9 = vsel %vm243_vm0, %v4834_v39, %v4667_v58  ;;  %v3006_v52 = vld [vmem:[%s2240_s11 + $0x890] sm:$0xff]  ;;  %v4836_v23 = vrot.slane %v2428_v43, 1  ;;  %v1120_v46 = vadd.f32 %v1022_v54, %v873_v24  ;;  %v3028_v54 = vld [vmem:[%s2240_s11 + $0x2f8] sm:$0xff] }
  0x82   : > { %v380_v6 = vadd.f32 %v283_v9, %v133_v5  ;;  %v530_v1 = vsel %vm490_vm1, %v4835_v17, %v4664_v60  ;;  %v4668_v5 = vrot.slane %v2980_v63, 4  ;;  %v4671_v10 = vrot.slane %v2983_v30, 5  ;;  %v3016_v9 = vld [vmem:[%s2240_s11 + $0x1d8] sm:$0xff] }
  0x83   : > { %v1993_v39 = vsel %vm243_vm0, %v4836_v23, %v4665_v29  ;;  %v3019_v7 = vmul.f32 0.125, %v1860_v45  ;;  %v4837_v60 = vrot.slane %v2566_v49, 3  ;;  %v4670_v23 = vrot.slane %v2997_v41, 6  ;;  %v3031_v24 = vld [vmem:[%s2240_s11 + $0x418] sm:$0xff] }
  0x84   : > { %2099 = vst [vmem:[%s2367_s15 + $0x38] sm:$0xff] %v1993_v39  ;;  %v627_v17 = vadd.f32 %v530_v1, %v380_v6  ;;  %4838 = vst [vmem:[#allocation13_spill] sm:$0xff] %v3031_v24  ;;  %v1367_v29 = vadd.f32 %v1269_v59, %v1120_v46  ;;  %v4839_v39 = vrot.slane %v2947_v12, 7  ;;  %v4840_v45 = vrot.slane %v2529_v19, 7  ;;  %v3063_v26 = vld [vmem:[%s2240_s11 + $0x658] sm:$0xff] }
  0x85   : > { %v777_v43 = vsel %vm737_vm2, %v4837_v60, %v4666_v14  ;;  %v4841_v49 = vrot.slane %v2580_v0, 4  ;;  %v4674_v1 = vrot.slane %v3006_v52, 7  ;;  %v3045_v14 = vld [vmem:[%s2240_s11 + $0x538] sm:$0xff]  ;;  %v4672_v58 = vrot.slane %v3019_v7, 1  ;;  %4844 = vst [vmem:[#allocation14_spill] sm:$0xff] %v3063_v26 }
  0x86   : > { %v1751_v6 = vsel %vm1725_vm6, %v4840_v45, %v4839_v39  ;;  %v874_v59 = vadd.f32 %v777_v43, %v627_v17  ;;  %v4842_v19 = vrot.slane %v2587_v51, 5  ;;  %v134_v39 = vld [vmem:[%s2240_s11 + $0x88] sm:$0xff]  ;;  %v4673_v0 = vrot.slane %v3016_v9, 1  ;;  %v3066_v51 = vld [vmem:[%s2240_s11 + $0x778] sm:$0xff] }
  0x87   : > { %v1024_v60 = vsel %vm984_vm3, %v4841_v49, %v4668_v5  ;;  %v1614_v45 = vadd.f32 %v1516_v62, %v1367_v29  ;;  %v4843_v49 = vrot.slane %v2600_v37, 6  ;;  %v4845_v29 = vrot.slane %v2505_v3, 1  ;;  %v4848_v3 = vld [vmem:[#allocation3_spill] sm:$0xff] }
  0x88   : > { %v1271_v46 = vsel %vm1231_vm4, %v4842_v19, %v4671_v10  ;;  %v1121_v19 = vadd.f32 %v1024_v60, %v874_v59  ;;  %v4846_v37 = vrot.slane %v2620_v40, 1  ;;  %v3080_v10 = vld [vmem:[%s2240_s11 + $0x1e0] sm:$0xff]  ;;  %v4849_v17 = vrot.slane %v4848_v3, 7  ;;  %v4851_v40 = vld [vmem:[#allocation4_spill] sm:$0xff] }
  0x89   : > { %v1518_v5 = vsel %vm1478_vm5, %v4843_v49, %v4670_v23  ;;  %v1995_v62 = vsel %vm243_vm0, %v4845_v29, %v4672_v58  ;;  %4847 = vst [vmem:[#allocation15_spill] sm:$0xff] %v3080_v10  ;;  %v1861_v43 = vadd.f32 %v1751_v6, %v1614_v45  ;;  %v4850_v29 = vrot.slane %v3028_v54, 2  ;;  %v3097_v23 = vld [vmem:[%s2240_s11 + $0x300] sm:$0xff] }
  0x8a   : > { %v285_v49 = vsel %vm243_vm0, %v4846_v37, %v4673_v0  ;;  %2100 = vst [vmem:[%s2367_s15 + $0x40] sm:$0xff] %v1995_v62  ;;  %v1753_v60 = vsel %vm1725_vm6, %v4849_v17, %v4674_v1  ;;  %v4852_v58 = vrot.slane %v4851_v40, 2  ;;  %v3094_v0 = vld [vmem:[%s2240_s11 + $0x898] sm:$0xff]  ;;  %v1368_v6 = vadd.f32 %v1271_v46, %v1121_v19  ;;  %v135_v19 = vld [vmem:[%s2240_s11 + $0x90] sm:$0xff] }
  0x8b   : > { %v381_v59 = vadd.f32 %v285_v49, %v134_v39  ;;  %4853 = vst [vmem:[#allocation3_spill] sm:$0xff] %v3094_v0  ;;  %v4854_v45 = vrot.slane %v3031_v24, 3  ;;  %v4855_v62 = vld [vmem:[#allocation5_spill] sm:$0xff]  ;;  %v4676_v39 = vrot.slane %v3063_v26, 5  ;;  %v4678_v49 = vrot.slane %v3066_v51, 6 }
  0x8c   : > { %v532_v37 = vsel %vm490_vm1, %v4852_v58, %v4850_v29  ;;  %v4856_v3 = vrot.slane %v4855_v62, 3  ;;  %v3106_v40 = vmul.f32 0.125, %v1861_v43  ;;  %v4857_v29 = vrot.slane %v3045_v14, 4  ;;  %v3116_v62 = vld [vmem:[%s2240_s11 + $0x420] sm:$0xff] }
  0x8d   : > { %v628_v58 = vadd.f32 %v532_v37, %v381_v59  ;;  %v4858_v1 = vrot.slane %v2653_v34, 4  ;;  %v4859_v43 = vrot.slane %v2666_v53, 5  ;;  %v3126_v34 = vld [vmem:[%s2240_s11 + $0x540] sm:$0xff] }
  0x8e   : > { %v779_v17 = vsel %vm737_vm2, %v4856_v3, %v4854_v45  ;;  %v1615_v45 = vadd.f32 %v1518_v5, %v1368_v6  ;;  %4860 = vst [vmem:[#allocation4_spill] sm:$0xff] %v3126_v34  ;;  %v4861_v5 = vrot.slane %v2675_v27, 6  ;;  %v4862_v6 = vrot.slane %v3080_v10, 1  ;;  %v3143_v59 = vld [vmem:[%s2240_s11 + $0x780] sm:$0xff] }
  0x8f   : > { %v1026_v46 = vsel %vm984_vm3, %v4858_v1, %v4857_v29  ;;  %v1273_v3 = vsel %vm1231_vm4, %v4859_v43, %v4676_v39  ;;  %v3129_v1 = vld [vmem:[%s2240_s11 + $0x660] sm:$0xff]  ;;  %v875_v24 = vadd.f32 %v779_v17, %v628_v58  ;;  %v4863_v43 = vrot.slane %v2690_v44, 1  ;;  %4864 = vst [vmem:[#allocation5_spill] sm:$0xff] %v3143_v59  ;;  %v4866_v58 = vld [vmem:[#allocation8_spill] sm:$0xff] }
  0x90   : > { %v1520_v53 = vsel %vm1478_vm5, %v4861_v5, %v4678_v49  ;;  %v1862_v37 = vadd.f32 %v1753_v60, %v1615_v45  ;;  %v4865_v17 = vrot.slane %v3097_v23, 2  ;;  %v4867_v29 = vrot.slane %v4866_v58, 2  ;;  %v3152_v49 = vld [vmem:[%s2240_s11 + $0x8a0] sm:$0xff]  ;;  %v3162_v45 = vld [vmem:[%s2240_s11 + $0x1e8] sm:$0xff] }
  0x91   : > { %v287_v39 = vsel %vm243_vm0, %v4863_v43, %v4862_v6  ;;  %v4680_v5 = vrot.slane %v3116_v62, 3  ;;  %v4868_v44 = vrot.slane %v3106_v40, 1  ;;  %v4869_v10 = vld [vmem:[#allocation2_spill] sm:$0xff]  ;;  %v1122_v60 = vadd.f32 %v1026_v46, %v875_v24  ;;  %v3174_v24 = vld [vmem:[%s2240_s11 + $0x308] sm:$0xff] }
  0x92   : > { %v382_v26 = vadd.f32 %v287_v39, %v135_v19  ;;  %v534_v27 = vsel %vm490_vm1, %v4867_v29, %v4865_v17  ;;  %v4870_v6 = vrot.slane %v4869_v10, 1  ;;  %v4683_v39 = vrot.slane %v3126_v34, 4  ;;  %v3177_v46 = vld [vmem:[%s2240_s11 + $0x428] sm:$0xff] }
  0x93   : > { %v3165_v29 = vmul.f32 0.125, %v1862_v37  ;;  %v4872_v58 = vrot.slane %v2699_v47, 3  ;;  %v4874_v37 = vld [vmem:[#allocation7_spill] sm:$0xff]  ;;  %v4876_v47 = vrot.slane %v2706_v50, 4 }
  0x94   : > { %v1997_v43 = vsel %vm243_vm0, %v4870_v6, %v4868_v44  ;;  %v629_v17 = vadd.f32 %v534_v27, %v382_v26  ;;  %v1369_v6 = vadd.f32 %v1273_v3, %v1122_v60  ;;  %v4875_v19 = vrot.slane %v4874_v37, 7  ;;  %v4879_v37 = vld [vmem:[#allocation9_spill] sm:$0xff]  ;;  %v3209_v44 = vld [vmem:[%s2240_s11 + $0x668] sm:$0xff] }
  0x95   : > { %2101 = vst [vmem:[%s2367_s15 + $0x48] sm:$0xff] %v1997_v43  ;;  %4871 = vst [vmem:[#allocation8_spill] sm:$0xff] %v3165_v29  ;;  %v781_v10 = vsel %vm737_vm2, %v4872_v58, %v4680_v5  ;;  %v4873_v43 = vrot.slane %v3094_v0, 7  ;;  %v1028_v27 = vsel %vm984_vm3, %v4876_v47, %v4683_v39  ;;  %v3191_v5 = vld [vmem:[%s2240_s11 + $0x548] sm:$0xff]  ;;  %v4878_v60 = vrot.slane %v3129_v1, 5 }
  0x96   : > { %4877 = vst [vmem:[#allocation2_spill] sm:$0xff] %v3191_v5  ;;  %v876_v3 = vadd.f32 %v781_v10, %v629_v17  ;;  %v4880_v0 = vrot.slane %v4879_v37, 5  ;;  %v1616_v34 = vadd.f32 %v1520_v53, %v1369_v6  ;;  %v4881_v47 = vrot.slane %v3143_v59, 6  ;;  %4883 = vst [vmem:[#allocation7_spill] sm:$0xff] %v3209_v44  ;;  %v3212_v37 = vld [vmem:[%s2240_s11 + $0x788] sm:$0xff]  ;;  %v3226_v10 = vld [vmem:[%s2240_s11 + $0x1f0] sm:$0xff] }
  0x97   : > { %v1755_v26 = vsel %vm1725_vm6, %v4875_v19, %v4873_v43  ;;  %v136_v43 = vld [vmem:[%s2240_s11 + $0x98] sm:$0xff]  ;;  %v4882_v39 = vrot.slane %v2723_v61, 6  ;;  %v4887_v61 = vrot.slane %v3162_v45, 1  ;;  %v4686_v17 = vrot.slane %v3191_v5, 4 }
  0x98   : > { %v1275_v19 = vsel %vm1231_vm4, %v4880_v0, %v4878_v60  ;;  %v4884_v0 = vrot.slane %v3165_v29, 1  ;;  %v4885_v60 = vld [vmem:[#allocation6_spill] sm:$0xff]  ;;  %v1123_v50 = vadd.f32 %v1028_v27, %v876_v3  ;;  %v1863_v59 = vadd.f32 %v1755_v26, %v1616_v34 }
  0x99   : > { %v1522_v58 = vsel %vm1478_vm5, %v4882_v39, %v4881_v47  ;;  %v4886_v53 = vrot.slane %v4885_v60, 1  ;;  %v4888_v39 = vrot.slane %v2733_v11, 1  ;;  %v4889_v29 = vrot.slane %v3152_v49, 7 }
  0x9a   : > { %v4890_v60 = vrot.slane %v2741_v57, 7  ;;  %v4892_v11 = vrot.slane %v2744_v4, 2  ;;  %v1370_v34 = vadd.f32 %v1275_v19, %v1123_v50  ;;  %v4893_v26 = vrot.slane %v3177_v46, 3  ;;  %v137_v50 = vld [vmem:[%s2240_s11 + $0xa0] sm:$0xff] }
  0x9b   : > { %v1999_v6 = vsel %vm243_vm0, %v4886_v53, %v4884_v0  ;;  %v289_v47 = vsel %vm243_vm0, %v4888_v39, %v4887_v61  ;;  %v4891_v0 = vrot.slane %v3174_v24, 2  ;;  %v3240_v61 = vld [vmem:[%s2240_s11 + $0x8a8] sm:$0xff]  ;;  %v3243_v39 = vld [vmem:[%s2240_s11 + $0x310] sm:$0xff]  ;;  %v3252_v4 = vmul.f32 0.125, %v1863_v59 }
  0x9c   : > { %2102 = vst [vmem:[%s2367_s15 + $0x50] sm:$0xff] %v1999_v6  ;;  %v1757_v27 = vsel %vm1725_vm6, %v4890_v60, %v4889_v29  ;;  %v383_v3 = vadd.f32 %v289_v47, %v136_v43  ;;  %v4894_v6 = vld [vmem:[#allocation10_spill] sm:$0xff]  ;;  %v4687_v43 = vrot.slane %v3209_v44, 5  ;;  %v4690_v47 = vrot.slane %v3212_v37, 6 }
  0x9d   : > { %v536_v53 = vsel %vm490_vm1, %v4892_v11, %v4891_v0  ;;  %v4895_v57 = vrot.slane %v4894_v6, 3  ;;  %v4896_v0 = vrot.slane %v2768_v35, 4  ;;  %v3262_v6 = vld [vmem:[%s2240_s11 + $0x430] sm:$0xff]  ;;  %v4897_v59 = vrot.slane %v2776_v28, 5 }
  0x9e   : > { %v630_v60 = vadd.f32 %v536_v53, %v383_v3  ;;  %v3272_v35 = vld [vmem:[%s2240_s11 + $0x550] sm:$0xff] }
  0x9f   : > { %v783_v29 = vsel %vm737_vm2, %v4895_v57, %v4893_v26  ;;  %v1030_v19 = vsel %vm984_vm3, %v4896_v0, %v4686_v17  ;;  %v1617_v26 = vadd.f32 %v1522_v58, %v1370_v34  ;;  %v1277_v57 = vsel %vm1231_vm4, %v4897_v59, %v4687_v43  ;;  %v3275_v0 = vld [vmem:[%s2240_s11 + $0x670] sm:$0xff] }
  0xa0   : > { %v4691_v17 = vrot.slane %v3252_v4, 1  ;;  %v877_v11 = vadd.f32 %v783_v29, %v630_v60  ;;  %v4898_v58 = vld [vmem:[#allocation12_spill] sm:$0xff]  ;;  %v4900_v59 = vrot.slane %v3226_v10, 1  ;;  %v4901_v43 = vrot.slane %v2792_v33, 1  ;;  %v4904_v33 = vld [vmem:[#allocation11_spill] sm:$0xff] }
  0xa1   : > { %v4899_v34 = vrot.slane %v4898_v58, 6  ;;  %v3289_v53 = vld [vmem:[%s2240_s11 + $0x790] sm:$0xff]  ;;  %v1864_v44 = vadd.f32 %v1757_v27, %v1617_v26  ;;  %v4902_v29 = vrot.slane %v3243_v39, 2  ;;  %v4903_v60 = vrot.slane %v2812_v56, 2 }
  0xa2   : > { %v291_v3 = vsel %vm243_vm0, %v4901_v43, %v4900_v59  ;;  %v4905_v43 = vrot.slane %v4904_v33, 1  ;;  %v1124_v27 = vadd.f32 %v1030_v19, %v877_v11  ;;  %v4694_v26 = vrot.slane %v3275_v0, 5  ;;  %v3320_v19 = vld [vmem:[%s2240_s11 + $0x318] sm:$0xff] }
  0xa3   : > { %v1524_v28 = vsel %vm1478_vm5, %v4899_v34, %v4690_v47  ;;  %v384_v5 = vadd.f32 %v291_v3, %v137_v50  ;;  %v538_v58 = vsel %vm490_vm1, %v4903_v60, %v4902_v29  ;;  %v4692_v34 = vrot.slane %v3262_v6, 3  ;;  %v3298_v47 = vld [vmem:[%s2240_s11 + $0x8b0] sm:$0xff]  ;;  %v3308_v3 = vld [vmem:[%s2240_s11 + $0x1f8] sm:$0xff] }
  0xa4   : > { %v2001_v59 = vsel %vm243_vm0, %v4905_v43, %v4691_v17  ;;  %v4693_v50 = vrot.slane %v3272_v35, 4  ;;  %v3311_v56 = vmul.f32 0.125, %v1864_v44  ;;  %v4907_v60 = vrot.slane %v2825_v16, 3  ;;  %v3323_v11 = vld [vmem:[%s2240_s11 + $0x438] sm:$0xff] }
  0xa5   : > { %2103 = vst [vmem:[%s2367_s15 + $0x58] sm:$0xff] %v2001_v59  ;;  %v631_v29 = vadd.f32 %v538_v58, %v384_v5  ;;  %v1371_v17 = vadd.f32 %v1277_v57, %v1124_v27  ;;  %v4908_v59 = vrot.slane %v3240_v61, 7  ;;  %v4909_v44 = vrot.slane %v2806_v8, 7  ;;  %v3355_v43 = vld [vmem:[%s2240_s11 + $0x678] sm:$0xff] }
  0xa6   : > { %4906 = vst [vmem:[#allocation9_spill] sm:$0xff] %v3311_v56  ;;  %v785_v33 = vsel %vm737_vm2, %v4907_v60, %v4692_v34  ;;  %v4910_v16 = vrot.slane %v2828_v22, 4  ;;  %v3337_v34 = vld [vmem:[%s2240_s11 + $0x558] sm:$0xff]  ;;  %v4911_v8 = vrot.slane %v2843_v21, 5  ;;  %v4696_v22 = vrot.slane %v3308_v3, 1 }
  0xa7   : > { %v1759_v5 = vsel %vm1725_vm6, %v4909_v44, %v4908_v59  ;;  %v878_v57 = vadd.f32 %v785_v33, %v631_v29  ;;  %v138_v59 = vld [vmem:[%s2240_s11 + $0xa8] sm:$0xff]  ;;  %v1618_v44 = vadd.f32 %v1524_v28, %v1371_v17  ;;  %v3358_v21 = vld [vmem:[%s2240_s11 + $0x798] sm:$0xff]  ;;  %v4915_v17 = vrot.slane %v2904_v36, 1  ;;  %v3372_v33 = vld [vmem:[%s2240_s11 + $0x200] sm:$0xff] }
  0xa8   : > { %v1032_v58 = vsel %vm984_vm3, %v4910_v16, %v4693_v50  ;;  %v1279_v27 = vsel %vm1231_vm4, %v4911_v8, %v4694_v26  ;;  %v4912_v16 = vrot.slane %v3289_v53, 6  ;;  %v4913_v50 = vrot.slane %v2846_v42, 6 }
  0xa9   : > { %v4914_v8 = vrot.slane %v3311_v56, 1  ;;  %v1125_v26 = vadd.f32 %v1032_v58, %v878_v57  ;;  %v4916_v42 = vrot.slane %v2872_v2, 1  ;;  %v1865_v29 = vadd.f32 %v1759_v5, %v1618_v44 }
  0xaa   : > { %v1526_v60 = vsel %vm1478_vm5, %v4913_v50, %v4912_v16  ;;  %v4697_v16 = vrot.slane %v3337_v34, 4  ;;  %v4917_v56 = vrot.slane %v3298_v47, 7  ;;  %v4918_v36 = vrot.slane %v2862_v31, 7 }
  0xab   : > { %v2003_v28 = vsel %vm243_vm0, %v4915_v17, %v4914_v8  ;;  %v293_v50 = vsel %vm243_vm0, %v4916_v42, %v4696_v22  ;;  %v4919_v8 = vrot.slane %v3320_v19, 2  ;;  %v4920_v2 = vrot.slane %v2875_v55, 2  ;;  %v3386_v42 = vld [vmem:[%s2240_s11 + $0x8b8] sm:$0xff]  ;;  %v3389_v22 = vld [vmem:[%s2240_s11 + $0x320] sm:$0xff] }
  0xac   : > { %2104 = vst [vmem:[%s2367_s15 + $0x60] sm:$0xff] %v2003_v28  ;;  %v1761_v58 = vsel %vm1725_vm6, %v4918_v36, %v4917_v56  ;;  %v385_v57 = vadd.f32 %v293_v50, %v138_v59  ;;  %v1372_v5 = vadd.f32 %v1279_v27, %v1125_v26  ;;  %v4921_v44 = vrot.slane %v3323_v11, 3  ;;  %v139_v27 = vld [vmem:[%s2240_s11 + $0xb0] sm:$0xff] }
  0xad   : > { %v540_v17 = vsel %vm490_vm1, %v4920_v2, %v4919_v8  ;;  %v4922_v31 = vrot.slane %v2888_v48, 3  ;;  %v4698_v59 = vrot.slane %v3355_v43, 5  ;;  %v4699_v28 = vrot.slane %v3358_v21, 6  ;;  %v3408_v48 = vld [vmem:[%s2240_s11 + $0x440] sm:$0xff] }
  0xae   : > { %v3398_v55 = vmul.f32 0.125, %v1865_v29  ;;  %v632_v50 = vadd.f32 %v540_v17, %v385_v57  ;;  %v4923_v36 = vrot.slane %v2891_v18, 4  ;;  %v4702_v8 = vrot.slane %v3372_v33, 1  ;;  %v3418_v18 = vld [vmem:[%s2240_s11 + $0x560] sm:$0xff] }
  0xaf   : > { %v787_v56 = vsel %vm737_vm2, %v4922_v31, %v4921_v44  ;;  %v1619_v2 = vadd.f32 %v1526_v60, %v1372_v5  ;;  %v4924_v29 = vrot.slane %v2917_v38, 5  ;;  %v3421_v31 = vld [vmem:[%s2240_s11 + $0x680] sm:$0xff]  ;;  %v4925_v60 = vrot.slane %v2920_v25, 6 }
  0xb0   : > { %v1034_v26 = vsel %vm984_vm3, %v4923_v36, %v4697_v16  ;;  %v4700_v36 = vrot.slane %v3398_v55, 1  ;;  %v879_v16 = vadd.f32 %v787_v56, %v632_v50  ;;  %v4926_v5 = vrot.slane %v2934_v15, 1 }
  0xb1   : > { %v1281_v44 = vsel %vm1231_vm4, %v4924_v29, %v4698_v59  ;;  %v1528_v38 = vsel %vm1478_vm5, %v4925_v60, %v4699_v28  ;;  %v3435_v59 = vld [vmem:[%s2240_s11 + $0x7a0] sm:$0xff]  ;;  %v1866_v57 = vadd.f32 %v1761_v58, %v1619_v2  ;;  %v4927_v56 = vrot.slane %v3389_v22, 2 }
  0xb2   : > { %v295_v29 = vsel %vm243_vm0, %v4926_v5, %v4702_v8  ;;  %v4928_v50 = vrot.slane %v2950_v13, 2  ;;  %v4701_v60 = vrot.slane %v3408_v48, 3  ;;  %v3444_v28 = vld [vmem:[%s2240_s11 + $0x8c0] sm:$0xff]  ;;  %v4929_v15 = vrot.slane %v2960_v20, 1 }
  0xb3   : > { %v386_v17 = vadd.f32 %v295_v29, %v139_v27  ;;  %v1126_v58 = vadd.f32 %v1034_v26, %v879_v16  ;;  %v4703_v27 = vrot.slane %v3418_v18, 4  ;;  %v4705_v2 = vrot.slane %v3421_v31, 5  ;;  %v3454_v29 = vld [vmem:[%s2240_s11 + $0x208] sm:$0xff] }
  0xb4   : > { %v542_v25 = vsel %vm490_vm1, %v4928_v50, %v4927_v56  ;;  %v2005_v5 = vsel %vm243_vm0, %v4929_v15, %v4700_v36  ;;  %v3457_v13 = vmul.f32 0.125, %v1866_v57  ;;  %v4930_v50 = vrot.slane %v2970_v32, 3  ;;  %v3466_v16 = vld [vmem:[%s2240_s11 + $0x328] sm:$0xff] }
  0xb5   : > { %2105 = vst [vmem:[%s2367_s15 + $0x68] sm:$0xff] %v2005_v5  ;;  %v633_v56 = vadd.f32 %v542_v25, %v386_v17  ;;  %v4704_v15 = vrot.slane %v3435_v59, 6  ;;  %v3469_v26 = vld [vmem:[%s2240_s11 + $0x448] sm:$0xff]  ;;  %v1373_v36 = vadd.f32 %v1281_v44, %v1126_v58  ;;  %v4932_v5 = vrot.slane %v3386_v42, 7 }
  0xb6   : > { %v789_v20 = vsel %vm737_vm2, %v4930_v50, %v4701_v60  ;;  %4931 = vst [vmem:[#allocation6_spill] sm:$0xff] %v3469_v26  ;;  %v4933_v57 = vrot.slane %v2947_v12, 7  ;;  %v4934_v32 = vrot.slane %v2980_v63, 4  ;;  %v3483_v60 = vld [vmem:[%s2240_s11 + $0x568] sm:$0xff]  ;;  %v4707_v8 = vrot.slane %v3457_v13, 1 }
  0xb7   : > { %4935 = vst [vmem:[#allocation10_spill] sm:$0xff] %v3483_v60  ;;  %v880_v44 = vadd.f32 %v789_v20, %v633_v56  ;;  %v4936_v12 = vrot.slane %v2983_v30, 5  ;;  %v4706_v63 = vrot.slane %v3454_v29, 1  ;;  %v3501_v50 = vld [vmem:[%s2240_s11 + $0x688] sm:$0xff]  ;;  %v4941_v56 = vrot.slane %v3444_v28, 7 }
  0xb8   : > { %v1763_v17 = vsel %vm1725_vm6, %v4933_v57, %v4932_v5  ;;  %v1036_v25 = vsel %vm984_vm3, %v4934_v32, %v4703_v27  ;;  %v140_v5 = vld [vmem:[%s2240_s11 + $0xb8] sm:$0xff]  ;;  %v1620_v57 = vadd.f32 %v1528_v38, %v1373_v36  ;;  %v4937_v32 = vrot.slane %v2997_v41, 6  ;;  %4938 = vst [vmem:[#allocation12_spill] sm:$0xff] %v3501_v50  ;;  %v3504_v30 = vld [vmem:[%s2240_s11 + $0x7a8] sm:$0xff] }
  0xb9   : > { %v1283_v58 = vsel %vm1231_vm4, %v4936_v12, %v4705_v2  ;;  %v4939_v36 = vrot.slane %v3019_v7, 1  ;;  %v1127_v12 = vadd.f32 %v1036_v25, %v880_v44  ;;  %v4940_v41 = vrot.slane %v3016_v9, 1  ;;  %v3518_v2 = vld [vmem:[%s2240_s11 + $0x210] sm:$0xff] }
  0xba   : > { %v1530_v27 = vsel %vm1478_vm5, %v4937_v32, %v4704_v15  ;;  %v4708_v15 = vrot.slane %v3483_v60, 4  ;;  %v1867_v20 = vadd.f32 %v1763_v17, %v1620_v57  ;;  %v4942_v7 = vrot.slane %v3006_v52, 7 }
  0xbb   : > { %v2007_v38 = vsel %vm243_vm0, %v4939_v36, %v4707_v8  ;;  %v297_v32 = vsel %vm243_vm0, %v4940_v41, %v4706_v63  ;;  %v4943_v36 = vrot.slane %v3466_v16, 2  ;;  %v4944_v9 = vrot.slane %v3028_v54, 2  ;;  %v3532_v63 = vld [vmem:[%s2240_s11 + $0x8c8] sm:$0xff]  ;;  %v3535_v8 = vld [vmem:[%s2240_s11 + $0x330] sm:$0xff] }
  0xbc   : > { %2106 = vst [vmem:[%s2367_s15 + $0x70] sm:$0xff] %v2007_v38  ;;  %v1765_v25 = vsel %vm1725_vm6, %v4942_v7, %v4941_v56  ;;  %v387_v44 = vadd.f32 %v297_v32, %v140_v5  ;;  %4945 = vst [vmem:[#allocation11_spill] sm:$0xff] %v3532_v63  ;;  %v1374_v17 = vadd.f32 %v1283_v58, %v1127_v12  ;;  %v4946_v57 = vrot.slane %v3469_v26, 3  ;;  %v4947_v38 = vld [vmem:[#allocation13_spill] sm:$0xff]  ;;  %v141_v12 = vld [vmem:[%s2240_s11 + $0xc0] sm:$0xff] }
  0xbd   : > { %v544_v41 = vsel %vm490_vm1, %v4944_v9, %v4943_v36  ;;  %v4948_v52 = vrot.slane %v4947_v38, 3  ;;  %v4709_v5 = vrot.slane %v3501_v50, 5  ;;  %v3544_v54 = vmul.f32 0.125, %v1867_v20  ;;  %v3554_v38 = vld [vmem:[%s2240_s11 + $0x450] sm:$0xff] }
  0xbe   : > { %v634_v7 = vadd.f32 %v544_v41, %v387_v44  ;;  %v4949_v36 = vrot.slane %v3045_v14, 4  ;;  %v3564_v14 = vld [vmem:[%s2240_s11 + $0x570] sm:$0xff] }
  0xbf   : > { %v791_v56 = vsel %vm737_vm2, %v4948_v52, %v4946_v57  ;;  %v1621_v57 = vadd.f32 %v1530_v27, %v1374_v17  ;;  %v4950_v52 = vld [vmem:[#allocation14_spill] sm:$0xff]  ;;  %4952 = vst [vmem:[#allocation13_spill] sm:$0xff] %v3564_v14  ;;  %v4953_v27 = vrot.slane %v3504_v30, 6  ;;  %v4954_v17 = vrot.slane %v3066_v51, 6  ;;  %v3581_v50 = vld [vmem:[%s2240_s11 + $0x7b0] sm:$0xff] }
  0xc0   : > { %v1038_v58 = vsel %vm984_vm3, %v4949_v36, %v4708_v15  ;;  %v4951_v20 = vrot.slane %v4950_v52, 5  ;;  %v3567_v36 = vld [vmem:[%s2240_s11 + $0x690] sm:$0xff]  ;;  %v4713_v15 = vrot.slane %v3544_v54, 1  ;;  %v881_v9 = vadd.f32 %v791_v56, %v634_v7  ;;  %4958 = vst [vmem:[#allocation14_spill] sm:$0xff] %v3581_v50 }
  0xc1   : > { %v1532_v52 = vsel %vm1478_vm5, %v4954_v17, %v4953_v27  ;;  %v1868_v60 = vadd.f32 %v1765_v25, %v1621_v57  ;;  %v4959_v56 = vrot.slane %v3535_v8, 2  ;;  %v4960_v7 = vrot.slane %v3097_v23, 2  ;;  %v3590_v17 = vld [vmem:[%s2240_s11 + $0x8d0] sm:$0xff]  ;;  %v3647_v57 = vld [vmem:[%s2240_s11 + $0x698] sm:$0xff] }
  0xc2   : > { %v1285_v32 = vsel %vm1231_vm4, %v4951_v20, %v4709_v5  ;;  %v4955_v20 = vrot.slane %v3518_v2, 1  ;;  %v4956_v5 = vld [vmem:[#allocation15_spill] sm:$0xff]  ;;  %v4714_v27 = vrot.slane %v3554_v38, 3  ;;  %v1128_v25 = vadd.f32 %v1038_v58, %v881_v9  ;;  %v3612_v58 = vld [vmem:[%s2240_s11 + $0x338] sm:$0xff] }
  0xc3   : > { %v4957_v44 = vrot.slane %v4956_v5, 1  ;;  %v546_v51 = vsel %vm490_vm1, %v4960_v7, %v4959_v56  ;;  %v4961_v5 = vrot.slane %v3106_v40, 1  ;;  %v3603_v23 = vmul.f32 0.125, %v1868_v60  ;;  %v3615_v9 = vld [vmem:[%s2240_s11 + $0x458] sm:$0xff]  ;;  %v4965_v60 = vld [vmem:[#allocation3_spill] sm:$0xff] }
  0xc4   : > { %v4963_v56 = vrot.slane %v3116_v62, 3  ;;  %v4967_v62 = vld [vmem:[#allocation4_spill] sm:$0xff]  ;;  %v3629_v7 = vld [vmem:[%s2240_s11 + $0x578] sm:$0xff] }
  0xc5   : > { %v299_v41 = vsel %vm243_vm0, %v4957_v44, %v4955_v20  ;;  %v2009_v44 = vsel %vm243_vm0, %v4961_v5, %v4713_v15  ;;  %4962 = vst [vmem:[#allocation15_spill] sm:$0xff] %v3603_v23  ;;  %v1375_v5 = vadd.f32 %v1285_v32, %v1128_v25  ;;  %v4966_v15 = vrot.slane %v4965_v60, 7  ;;  %4969 = vst [vmem:[#allocation3_spill] sm:$0xff] %v3629_v7 }
  0xc6   : > { %v388_v26 = vadd.f32 %v299_v41, %v141_v12  ;;  %v4716_v12 = vrot.slane %v3564_v14, 4  ;;  %v3600_v41 = vld [vmem:[%s2240_s11 + $0x218] sm:$0xff]  ;;  %2107 = vst [vmem:[%s2367_s15 + $0x78] sm:$0xff] %v2009_v44  ;;  %v793_v40 = vsel %vm737_vm2, %v4963_v56, %v4714_v27  ;;  %v4964_v44 = vrot.slane %v3532_v63, 7  ;;  %4975 = vst [vmem:[#allocation4_spill] sm:$0xff] %v3647_v57 }
  0xc7   : > { %v4970_v25 = vrot.slane %v3567_v36, 5  ;;  %v4971_v60 = vrot.slane %v3129_v1, 5  ;;  %v1622_v14 = vadd.f32 %v1532_v52, %v1375_v5  ;;  %v3650_v1 = vld [vmem:[%s2240_s11 + $0x7b8] sm:$0xff] }
  0xc8   : > { %v635_v20 = vadd.f32 %v546_v51, %v388_v26  ;;  %v1767_v26 = vsel %vm1725_vm6, %v4966_v15, %v4964_v44  ;;  %v4968_v51 = vrot.slane %v4967_v62, 4  ;;  %v142_v44 = vld [vmem:[%s2240_s11 + $0xc8] sm:$0xff] }
  0xc9   : > { %v1287_v15 = vsel %vm1231_vm4, %v4971_v60, %v4970_v25  ;;  %v4976_v25 = vrot.slane %v3603_v23, 1  ;;  %v4977_v60 = vld [vmem:[#allocation8_spill] sm:$0xff]  ;;  %v4981_v23 = vrot.slane %v3590_v17, 7 }
  0xca   : > { %v1040_v56 = vsel %vm984_vm3, %v4968_v51, %v4716_v12  ;;  %v882_v32 = vadd.f32 %v793_v40, %v635_v20  ;;  %v4972_v51 = vrot.slane %v3581_v50, 6  ;;  %v4973_v12 = vld [vmem:[#allocation5_spill] sm:$0xff]  ;;  %v4978_v52 = vrot.slane %v4977_v60, 1  ;;  %v3664_v40 = vld [vmem:[%s2240_s11 + $0x220] sm:$0xff] }
  0xcb   : > { %v4974_v27 = vrot.slane %v4973_v12, 6  ;;  %v4979_v12 = vrot.slane %v3600_v41, 1  ;;  %v4720_v20 = vrot.slane %v3629_v7, 4  ;;  %v1869_v50 = vadd.f32 %v1767_v26, %v1622_v14 }
  0xcc   : > { %v2011_v5 = vsel %vm243_vm0, %v4978_v52, %v4976_v25  ;;  %v1129_v62 = vadd.f32 %v1040_v56, %v882_v32  ;;  %v4982_v60 = vrot.slane %v3152_v49, 7  ;;  %v4983_v25 = vrot.slane %v3612_v58, 2 }
  0xcd   : > { %v1534_v63 = vsel %vm1478_vm5, %v4974_v27, %v4972_v51  ;;  %v4980_v27 = vrot.slane %v3162_v45, 1  ;;  %2108 = vst [vmem:[%s2367_s15 + $0x80] sm:$0xff] %v2011_v5  ;;  %v4984_v45 = vrot.slane %v3174_v24, 2  ;;  %v4985_v26 = vrot.slane %v3615_v9, 3 }
  0xce   : > { %v1769_v56 = vsel %vm1725_vm6, %v4982_v60, %v4981_v23  ;;  %v1376_v14 = vadd.f32 %v1287_v15, %v1129_v62  ;;  %v4986_v49 = vrot.slane %v3177_v46, 3  ;;  %v3690_v24 = vmul.f32 0.125, %v1869_v50  ;;  %v4987_v60 = vld [vmem:[#allocation2_spill] sm:$0xff]  ;;  %v143_v62 = vld [vmem:[%s2240_s11 + $0xd0] sm:$0xff] }
  0xcf   : > { %v301_v51 = vsel %vm243_vm0, %v4980_v27, %v4979_v12  ;;  %v548_v52 = vsel %vm490_vm1, %v4984_v45, %v4983_v25  ;;  %v3678_v12 = vld [vmem:[%s2240_s11 + $0x8d8] sm:$0xff]  ;;  %v3681_v27 = vld [vmem:[%s2240_s11 + $0x340] sm:$0xff]  ;;  %v4988_v25 = vrot.slane %v4987_v60, 4 }
  0xd0   : > { %v389_v32 = vadd.f32 %v301_v51, %v142_v44  ;;  %v795_v23 = vsel %vm737_vm2, %v4986_v49, %v4985_v26  ;;  %v4721_v44 = vrot.slane %v3647_v57, 5  ;;  %v3700_v46 = vld [vmem:[%s2240_s11 + $0x460] sm:$0xff]  ;;  %v1623_v26 = vadd.f32 %v1534_v63, %v1376_v14  ;;  %v4989_v49 = vld [vmem:[#allocation7_spill] sm:$0xff] }
  0xd1   : > { %v1042_v15 = vsel %vm984_vm3, %v4988_v25, %v4720_v20  ;;  %v4990_v50 = vrot.slane %v4989_v49, 5  ;;  %v3710_v60 = vld [vmem:[%s2240_s11 + $0x580] sm:$0xff]  ;;  %v4725_v20 = vrot.slane %v3690_v24, 1  ;;  %v4991_v63 = vrot.slane %v3650_v1, 6 }
  0xd2   : > { %v636_v51 = vadd.f32 %v548_v52, %v389_v32  ;;  %v3713_v25 = vld [vmem:[%s2240_s11 + $0x6a0] sm:$0xff]  ;;  %v4992_v14 = vrot.slane %v3212_v37, 6  ;;  %v1870_v57 = vadd.f32 %v1769_v56, %v1623_v26 }
  0xd3   : > { %v1289_v5 = vsel %vm1231_vm4, %v4990_v50, %v4721_v44  ;;  %v4993_v50 = vrot.slane %v3664_v40, 1  ;;  %v4994_v44 = vrot.slane %v3226_v10, 1  ;;  %v3727_v52 = vld [vmem:[%s2240_s11 + $0x7c0] sm:$0xff]  ;;  %v4997_v10 = vrot.slane %v3252_v4, 1 }
  0xd4   : > { %v883_v45 = vadd.f32 %v795_v23, %v636_v51  ;;  %v1536_v49 = vsel %vm1478_vm5, %v4992_v14, %v4991_v63  ;;  %v4995_v23 = vrot.slane %v3681_v27, 2  ;;  %v4996_v51 = vrot.slane %v3243_v39, 2  ;;  %v3736_v14 = vld [vmem:[%s2240_s11 + $0x8e0] sm:$0xff] }
  0xd5   : > { %v303_v32 = vsel %vm243_vm0, %v4994_v44, %v4993_v50  ;;  %v4724_v63 = vrot.slane %v3700_v46, 3  ;;  %v2013_v44 = vsel %vm243_vm0, %v4997_v10, %v4725_v20  ;;  %v4727_v26 = vrot.slane %v3713_v25, 5 }
  0xd6   : > { %v390_v7 = vadd.f32 %v303_v32, %v143_v62  ;;  %v550_v37 = vsel %vm490_vm1, %v4996_v51, %v4995_v23  ;;  %v1130_v56 = vadd.f32 %v1042_v15, %v883_v45  ;;  %v4726_v62 = vrot.slane %v3710_v60, 4  ;;  %v3746_v32 = vld [vmem:[%s2240_s11 + $0x228] sm:$0xff]  ;;  %2109 = vst [vmem:[%s2367_s15 + $0x88] sm:$0xff] %v2013_v44 }
  0xd7   : > { %v3749_v39 = vmul.f32 0.125, %v1870_v57  ;;  %v4999_v23 = vrot.slane %v3262_v6, 3  ;;  %v4728_v51 = vrot.slane %v3727_v52, 6  ;;  %v3758_v15 = vld [vmem:[%s2240_s11 + $0x348] sm:$0xff]  ;;  %v5000_v44 = vrot.slane %v3678_v12, 7 }
  0xd8   : > { %v637_v50 = vadd.f32 %v550_v37, %v390_v7  ;;  %v3761_v45 = vld [vmem:[%s2240_s11 + $0x468] sm:$0xff]  ;;  %v1377_v10 = vadd.f32 %v1289_v5, %v1130_v56  ;;  %v5001_v57 = vrot.slane %v3240_v61, 7  ;;  %v5002_v6 = vrot.slane %v3272_v35, 4 }
  0xd9   : > { %4998 = vst [vmem:[#allocation5_spill] sm:$0xff] %v3749_v39  ;;  %v797_v4 = vsel %vm737_vm2, %v4999_v23, %v4724_v63  ;;  %v3775_v63 = vld [vmem:[%s2240_s11 + $0x588] sm:$0xff]  ;;  %v4731_v20 = vrot.slane %v3749_v39, 1  ;;  %v5003_v61 = vrot.slane %v3275_v0, 5  ;;  %v4730_v35 = vrot.slane %v3746_v32, 1 }
  0xda   : > { %v1771_v7 = vsel %vm1725_vm6, %v5001_v57, %v5000_v44  ;;  %v1044_v37 = vsel %vm984_vm3, %v5002_v6, %v4726_v62  ;;  %v884_v5 = vadd.f32 %v797_v4, %v637_v50  ;;  %v144_v44 = vld [vmem:[%s2240_s11 + $0xd8] sm:$0xff]  ;;  %v1624_v57 = vadd.f32 %v1536_v49, %v1377_v10  ;;  %v3793_v23 = vld [vmem:[%s2240_s11 + $0x6a8] sm:$0xff]  ;;  %v3810_v4 = vld [vmem:[%s2240_s11 + $0x230] sm:$0xff] }
  0xdb   : > { %v1291_v56 = vsel %vm1231_vm4, %v5003_v61, %v4727_v26  ;;  %v5004_v6 = vrot.slane %v3289_v53, 6  ;;  %v3796_v0 = vld [vmem:[%s2240_s11 + $0x7c8] sm:$0xff]  ;;  %v5005_v61 = vld [vmem:[#allocation9_spill] sm:$0xff]  ;;  %v5007_v53 = vrot.slane %v3308_v3, 1  ;;  %v5008_v39 = vrot.slane %v3736_v14, 7 }
  0xdc   : > { %v5006_v49 = vrot.slane %v5005_v61, 1  ;;  %v1131_v26 = vadd.f32 %v1044_v37, %v884_v5  ;;  %v1871_v50 = vadd.f32 %v1771_v7, %v1624_v57  ;;  %v5009_v61 = vrot.slane %v3298_v47, 7 }
  0xdd   : > { %v1538_v62 = vsel %vm1478_vm5, %v5004_v6, %v4728_v51  ;;  %v305_v6 = vsel %vm243_vm0, %v5007_v53, %v4730_v35  ;;  %v4732_v51 = vrot.slane %v3775_v63, 4  ;;  %v5011_v3 = vrot.slane %v3320_v19, 2  ;;  %v3824_v35 = vld [vmem:[%s2240_s11 + $0x8e8] sm:$0xff] }
  0xde   : > { %v2015_v10 = vsel %vm243_vm0, %v5006_v49, %v4731_v20  ;;  %v1773_v37 = vsel %vm1725_vm6, %v5009_v61, %v5008_v39  ;;  %v391_v5 = vadd.f32 %v305_v6, %v144_v44  ;;  %v5010_v49 = vrot.slane %v3758_v15, 2  ;;  %v3827_v20 = vld [vmem:[%s2240_s11 + $0x350] sm:$0xff] }
  0xdf   : > { %2110 = vst [vmem:[%s2367_s15 + $0x90] sm:$0xff] %v2015_v10  ;;  %v1378_v7 = vadd.f32 %v1291_v56, %v1131_v26  ;;  %v5012_v57 = vrot.slane %v3761_v45, 3  ;;  %v5013_v47 = vrot.slane %v3323_v11, 3  ;;  %v4733_v44 = vrot.slane %v3793_v23, 5  ;;  %v145_v56 = vld [vmem:[%s2240_s11 + $0xe0] sm:$0xff]  ;;  %v3846_v11 = vld [vmem:[%s2240_s11 + $0x470] sm:$0xff] }
  0xe0   : > { %v552_v53 = vsel %vm490_vm1, %v5011_v3, %v5010_v49  ;;  %v4734_v10 = vrot.slane %v3796_v0, 6  ;;  %v3836_v19 = vmul.f32 0.125, %v1871_v50  ;;  %v5014_v61 = vrot.slane %v3337_v34, 4  ;;  %v3856_v34 = vld [vmem:[%s2240_s11 + $0x590] sm:$0xff] }
  0xe1   : > { %v799_v39 = vsel %vm737_vm2, %v5013_v47, %v5012_v57  ;;  %v638_v6 = vadd.f32 %v552_v53, %v391_v5  ;;  %v4737_v49 = vrot.slane %v3810_v4, 1  ;;  %v1625_v3 = vadd.f32 %v1538_v62, %v1378_v7  ;;  %v3859_v47 = vld [vmem:[%s2240_s11 + $0x6b0] sm:$0xff] }
  0xe2   : > { %v1046_v26 = vsel %vm984_vm3, %v5014_v61, %v4732_v51  ;;  %v5015_v50 = vrot.slane %v3355_v43, 5  ;;  %v4735_v61 = vrot.slane %v3836_v19, 1  ;;  %v5016_v62 = vrot.slane %v3358_v21, 6 }
  0xe3   : > { %v885_v51 = vadd.f32 %v799_v39, %v638_v6  ;;  %v5017_v7 = vrot.slane %v3372_v33, 1  ;;  %v1872_v5 = vadd.f32 %v1773_v37, %v1625_v3  ;;  %v5018_v39 = vrot.slane %v3827_v20, 2 }
  0xe4   : > { %v1293_v57 = vsel %vm1231_vm4, %v5015_v50, %v4733_v44  ;;  %v1540_v43 = vsel %vm1478_vm5, %v5016_v62, %v4734_v10  ;;  %v3873_v44 = vld [vmem:[%s2240_s11 + $0x7d0] sm:$0xff]  ;;  %v5019_v6 = vrot.slane %v3389_v22, 2  ;;  %v4736_v62 = vrot.slane %v3846_v11, 3 }
  0xe5   : > { %v307_v50 = vsel %vm243_vm0, %v5017_v7, %v4737_v49  ;;  %v3882_v10 = vld [vmem:[%s2240_s11 + $0x8f0] sm:$0xff]  ;;  %v5020_v33 = vrot.slane %v3398_v55, 1  ;;  %v1132_v37 = vadd.f32 %v1046_v26, %v885_v51  ;;  %v4740_v3 = vrot.slane %v3859_v47, 5  ;;  %v3904_v51 = vld [vmem:[%s2240_s11 + $0x358] sm:$0xff] }
  0xe6   : > { %v392_v53 = vadd.f32 %v307_v50, %v145_v56  ;;  %v554_v21 = vsel %vm490_vm1, %v5019_v6, %v5018_v39  ;;  %v4738_v56 = vrot.slane %v3856_v34, 4  ;;  %v3892_v50 = vld [vmem:[%s2240_s11 + $0x238] sm:$0xff]  ;;  %v3895_v22 = vmul.f32 0.125, %v1872_v5 }
  0xe7   : > { %v2017_v7 = vsel %vm243_vm0, %v5020_v33, %v4735_v61  ;;  %v5021_v6 = vrot.slane %v3408_v48, 3  ;;  %v4739_v33 = vrot.slane %v3873_v44, 6  ;;  %v3907_v26 = vld [vmem:[%s2240_s11 + $0x478] sm:$0xff]  ;;  %v1379_v61 = vadd.f32 %v1293_v57, %v1132_v37 }
  0xe8   : > { %2111 = vst [vmem:[%s2367_s15 + $0x98] sm:$0xff] %v2017_v7  ;;  %v639_v39 = vadd.f32 %v554_v21, %v392_v53  ;;  %5022 = vst [vmem:[#allocation8_spill] sm:$0xff] %v3907_v26  ;;  %v5023_v7 = vrot.slane %v3824_v35, 7  ;;  %v5024_v5 = vrot.slane %v3386_v42, 7  ;;  %v5025_v48 = vrot.slane %v3418_v18, 4 }
  0xe9   : > { %v801_v55 = vsel %vm737_vm2, %v5021_v6, %v4736_v62  ;;  %v3921_v62 = vld [vmem:[%s2240_s11 + $0x598] sm:$0xff]  ;;  %v4742_v49 = vrot.slane %v3895_v22, 1  ;;  %v5027_v42 = vrot.slane %v3421_v31, 5  ;;  %v4741_v18 = vrot.slane %v3892_v50, 1 }
  0xea   : > { %v1775_v53 = vsel %vm1725_vm6, %v5024_v5, %v5023_v7  ;;  %v1048_v21 = vsel %vm984_vm3, %v5025_v48, %v4738_v56  ;;  %5026 = vst [vmem:[#allocation2_spill] sm:$0xff] %v3921_v62  ;;  %v886_v57 = vadd.f32 %v801_v55, %v639_v39  ;;  %v146_v7 = vld [vmem:[%s2240_s11 + $0xe8] sm:$0xff]  ;;  %v1626_v5 = vadd.f32 %v1540_v43, %v1379_v61  ;;  %v3939_v6 = vld [vmem:[%s2240_s11 + $0x6b8] sm:$0xff] }
  0xeb   : > { %v1295_v37 = vsel %vm1231_vm4, %v5027_v42, %v4740_v3  ;;  %v5028_v48 = vrot.slane %v3435_v59, 6  ;;  %5029 = vst [vmem:[#allocation7_spill] sm:$0xff] %v3939_v6  ;;  %v3942_v31 = vld [vmem:[%s2240_s11 + $0x7d8] sm:$0xff]  ;;  %v5030_v61 = vrot.slane %v3457_v13, 1  ;;  %v5031_v59 = vrot.slane %v3454_v29, 1 }
  0xec   : > { %v1133_v42 = vadd.f32 %v1048_v21, %v886_v57  ;;  %v3956_v3 = vld [vmem:[%s2240_s11 + $0x240] sm:$0x7]  ;;  %v1873_v55 = vadd.f32 %v1775_v53, %v1626_v5  ;;  %v5032_v39 = vrot.slane %v3882_v10, 7  ;;  %v5033_v13 = vrot.slane %v3444_v28, 7 }
  0xed   : > { %v1542_v56 = vsel %vm1478_vm5, %v5028_v48, %v4739_v33  ;;  %v2019_v43 = vsel %vm243_vm0, %v5030_v61, %v4742_v49  ;;  %v309_v48 = vsel %vm243_vm0, %v5031_v59, %v4741_v18  ;;  %v4744_v33 = vrot.slane %v3921_v62, 4  ;;  %v3970_v18 = vld [vmem:[%s2240_s11 + $0x8f8] sm:$0xff]  ;;  %v3973_v49 = vld [vmem:[%s2240_s11 + $0x360] sm:$0xf] }
  0xee   : > { %2112 = vst [vmem:[%s2367_s15 + $0xa0] sm:$0xff] %v2019_v43  ;;  %v1777_v21 = vsel %vm1725_vm6, %v5033_v13, %v5032_v39  ;;  %v393_v57 = vadd.f32 %v309_v48, %v146_v7  ;;  %v5034_v61 = vrot.slane %v3904_v51, 2  ;;  %v5035_v29 = vrot.slane %v3466_v16, 2  ;;  %v5037_v43 = vld [vmem:[#allocation6_spill] sm:$0xff] }
  0xef   : > { %v1380_v53 = vadd.f32 %v1295_v37, %v1133_v42  ;;  %v5036_v5 = vrot.slane %v3907_v26, 3  ;;  %v5038_v28 = vrot.slane %v5037_v43, 3  ;;  %v4745_v7 = vrot.slane %v3939_v6, 5  ;;  %v147_v42 = vld [vmem:[%s2240_s11 + $0xf0] sm:$0xff]  ;;  %v3992_v43 = vld [vmem:[%s2240_s11 + $0x480] sm:$0x1f] }
  0xf0   : > { %v556_v59 = vsel %vm490_vm1, %v5035_v29, %v5034_v61  ;;  %v3982_v16 = vmul.f32 0.125, %v1873_v55  ;;  %v5039_v61 = vld [vmem:[#allocation10_spill] sm:$0xff]  ;;  %5041 = vst [vmem:[#allocation9_spill] sm:$0xff] %v3992_v43 }
  0xf1   : > { %v803_v39 = vsel %vm737_vm2, %v5038_v28, %v5036_v5  ;;  %v640_v13 = vadd.f32 %v556_v59, %v393_v57  ;;  %v5040_v29 = vrot.slane %v5039_v61, 4  ;;  %v1627_v5 = vadd.f32 %v1542_v56, %v1380_v53  ;;  %v5042_v28 = vld [vmem:[#allocation12_spill] sm:$0xff]  ;;  %v4002_v61 = vld [vmem:[%s2240_s11 + $0x5a0] sm:$0x3f] }
  0xf2   : > { %v5043_v55 = vrot.slane %v5042_v28, 5  ;;  %5044 = vst [vmem:[#allocation6_spill] sm:$0xff] %v4002_v61  ;;  %v5045_v56 = vrot.slane %v3942_v31, 6  ;;  %v5046_v53 = vrot.slane %v3504_v30, 6  ;;  %v4019_v59 = vld [vmem:[%s2240_s11 + $0x7e0] sm:$0xff] }
  0xf3   : > { %v1050_v37 = vsel %vm984_vm3, %v5040_v29, %v4744_v33  ;;  %v4005_v29 = vld [vmem:[%s2240_s11 + $0x6c0] sm:$0x7f]  ;;  %v4748_v33 = vrot.slane %v3982_v16, 1  ;;  %v887_v26 = vadd.f32 %v803_v39, %v640_v13  ;;  %5049 = vst [vmem:[#allocation10_spill] sm:$0xff] %v4019_v59  ;;  %v1874_v6 = vadd.f32 %v1777_v21, %v1627_v5  ;;  %v4085_v5 = vld [vmem:[%s2240_s11 + $0x6c8] sm:$0x7f] }
  0xf4   : > { %v1297_v48 = vsel %vm1231_vm4, %v5043_v55, %v4745_v7  ;;  %v1544_v28 = vsel %vm1478_vm5, %v5046_v53, %v5045_v56  ;;  %v5047_v55 = vrot.slane %v3956_v3, 1  ;;  %v5048_v7 = vrot.slane %v3518_v2, 1  ;;  %v4028_v53 = vld [vmem:[%s2240_s11 + $0x900] sm:$0xff] }
  0xf5   : > { %v5050_v39 = vrot.slane %v3973_v49, 2  ;;  %v5051_v13 = vrot.slane %v3535_v8, 2  ;;  %v4749_v56 = vrot.slane %v3992_v43, 3  ;;  %v5052_v2 = vrot.slane %v3544_v54, 1 }
  0xf6   : > { %v311_v57 = vsel %vm243_vm0, %v5048_v7, %v5047_v55  ;;  %v1134_v21 = vadd.f32 %v1050_v37, %v887_v26  ;;  %v4041_v8 = vmul.f32 0.125, %v1874_v6  ;;  %v4050_v26 = vld [vmem:[%s2240_s11 + $0x368] sm:$0xf] }
  0xf7   : > { %v394_v62 = vadd.f32 %v311_v57, %v147_v42  ;;  %v558_v30 = vsel %vm490_vm1, %v5051_v13, %v5050_v39  ;;  %v2021_v7 = vsel %vm243_vm0, %v5052_v2, %v4748_v33  ;;  %v4751_v42 = vrot.slane %v4002_v61, 4  ;;  %v4038_v57 = vld [vmem:[%s2240_s11 + $0x248] sm:$0x7] }
  0xf8   : > { %2113 = vst [vmem:[%s2367_s15 + $0xa8] sm:$0xff] %v2021_v7  ;;  %5053 = vst [vmem:[#allocation12_spill] sm:$0xff] %v4041_v8  ;;  %v5054_v39 = vrot.slane %v3554_v38, 3  ;;  %v4053_v37 = vld [vmem:[%s2240_s11 + $0x488] sm:$0x1f]  ;;  %v1381_v2 = vadd.f32 %v1297_v48, %v1134_v21  ;;  %v5055_v7 = vrot.slane %v3970_v18, 7 }
  0xf9   : > { %v641_v55 = vadd.f32 %v558_v30, %v394_v62  ;;  %v5056_v6 = vld [vmem:[#allocation11_spill] sm:$0xff]  ;;  %v5058_v38 = vld [vmem:[#allocation13_spill] sm:$0xff]  ;;  %v5061_v21 = vrot.slane %v4005_v29, 5 }
  0xfa   : > { %v805_v54 = vsel %vm737_vm2, %v5054_v39, %v4749_v56  ;;  %v5057_v33 = vrot.slane %v5056_v6, 7  ;;  %v5059_v30 = vrot.slane %v5058_v38, 4  ;;  %v4067_v13 = vld [vmem:[%s2240_s11 + $0x5a8] sm:$0x3f]  ;;  %v5062_v6 = vrot.slane %v3567_v36, 5  ;;  %5066 = vst [vmem:[#allocation13_spill] sm:$0xff] %v4085_v5 }
  0xfb   : > { %5060 = vst [vmem:[#allocation11_spill] sm:$0xff] %v4067_v13  ;;  %v888_v48 = vadd.f32 %v805_v54, %v641_v55  ;;  %v1628_v61 = vadd.f32 %v1544_v28, %v1381_v2  ;;  %v4088_v36 = vld [vmem:[%s2240_s11 + $0x7e8] sm:$0xff]  ;;  %v4755_v55 = vrot.slane %v4067_v13, 4  ;;  %v4102_v54 = vld [vmem:[%s2240_s11 + $0x250] sm:$0x7] }
  0xfc   : > { %v1779_v62 = vsel %vm1725_vm6, %v5057_v33, %v5055_v7  ;;  %v1052_v39 = vsel %vm984_vm3, %v5059_v30, %v4751_v42  ;;  %v1299_v33 = vsel %vm1231_vm4, %v5062_v6, %v5061_v21  ;;  %v148_v7 = vld [vmem:[%s2240_s11 + $0xf8] sm:$0xff]  ;;  %v5063_v30 = vrot.slane %v4019_v59, 6  ;;  %v5064_v42 = vld [vmem:[#allocation14_spill] sm:$0xff]  ;;  %v5068_v6 = vld [vmem:[#allocation15_spill] sm:$0xff] }
  0xfd   : > { %v5065_v56 = vrot.slane %v5064_v42, 6  ;;  %v5067_v21 = vrot.slane %v4041_v8, 1  ;;  %v5069_v28 = vrot.slane %v5068_v6, 1  ;;  %v1135_v38 = vadd.f32 %v1052_v39, %v888_v48 }
  0xfe   : > { %v5070_v42 = vrot.slane %v4038_v57, 1  ;;  %v1875_v59 = vadd.f32 %v1779_v62, %v1628_v61  ;;  %v5072_v8 = vrot.slane %v4028_v53, 7  ;;  %v5073_v6 = vrot.slane %v3590_v17, 7 }
  0xff   : > { %v1546_v43 = vsel %vm1478_vm5, %v5065_v56, %v5063_v30  ;;  %v2023_v2 = vsel %vm243_vm0, %v5069_v28, %v5067_v21  ;;  %v5071_v56 = vrot.slane %v3600_v41, 1  ;;  %v5074_v21 = vrot.slane %v4050_v26, 2 }
 0x100   : > { %2114 = vst [vmem:[%s2367_s15 + $0xb0] sm:$0xff] %v2023_v2  ;;  %v1781_v39 = vsel %vm1725_vm6, %v5073_v6, %v5072_v8  ;;  %v5075_v41 = vrot.slane %v3612_v58, 2  ;;  %v1382_v61 = vadd.f32 %v1299_v33, %v1135_v38  ;;  %v5076_v62 = vrot.slane %v4053_v37, 3  ;;  %v5078_v6 = vld [vmem:[#allocation3_spill] sm:$0xff]  ;;  %v149_v38 = vld [vmem:[%s2240_s11 + $0x100] sm:$0xff] }
 0x101   : > { %v313_v30 = vsel %vm243_vm0, %v5071_v56, %v5070_v42  ;;  %v4116_v42 = vld [vmem:[%s2240_s11 + $0x908] sm:$0xff]  ;;  %v4119_v56 = vld [vmem:[%s2240_s11 + $0x370] sm:$0xf]  ;;  %v5077_v17 = vrot.slane %v3615_v9, 3  ;;  %v4128_v58 = vmul.f32 0.125, %v1875_v59 }
 0x102   : > { %v395_v48 = vadd.f32 %v313_v30, %v148_v7  ;;  %v560_v28 = vsel %vm490_vm1, %v5075_v41, %v5074_v21  ;;  %v4756_v7 = vrot.slane %v4085_v5, 5  ;;  %v5079_v21 = vrot.slane %v5078_v6, 4  ;;  %v4138_v9 = vld [vmem:[%s2240_s11 + $0x490] sm:$0x1f] }
 0x103   : > { %v807_v8 = vsel %vm737_vm2, %v5077_v17, %v5076_v62  ;;  %v1629_v62 = vadd.f32 %v1546_v43, %v1382_v61  ;;  %v5080_v17 = vld [vmem:[#allocation4_spill] sm:$0xff]  ;;  %v5082_v43 = vrot.slane %v4088_v36, 6  ;;  %v5083_v61 = vrot.slane %v3650_v1, 6 }
 0x104   : > { %v642_v30 = vadd.f32 %v560_v28, %v395_v48  ;;  %v1054_v33 = vsel %vm984_vm3, %v5079_v21, %v4755_v55  ;;  %v5081_v59 = vrot.slane %v5080_v17, 5  ;;  %v4148_v6 = vld [vmem:[%s2240_s11 + $0x5b0] sm:$0x3f]  ;;  %v4759_v55 = vrot.slane %v4128_v58, 1 }
 0x105   : > { %v4151_v21 = vld [vmem:[%s2240_s11 + $0x6d0] sm:$0x7f]  ;;  %v1548_v17 = vsel %vm1478_vm5, %v5083_v61, %v5082_v43  ;;  %v1876_v5 = vadd.f32 %v1781_v39, %v1629_v62  ;;  %v4760_v43 = vrot.slane %v4138_v9, 3 }
 0x106   : > { %v1301_v2 = vsel %vm1231_vm4, %v5081_v59, %v4756_v7  ;;  %v889_v41 = vadd.f32 %v807_v8, %v642_v30  ;;  %v5084_v59 = vrot.slane %v4102_v54, 1  ;;  %v5085_v7 = vrot.slane %v3664_v40, 1  ;;  %v4165_v28 = vld [vmem:[%s2240_s11 + $0x7f0] sm:$0xff] }
 0x107   : > { %v5086_v8 = vrot.slane %v4119_v56, 2  ;;  %v5087_v30 = vrot.slane %v3681_v27, 2  ;;  %v4174_v61 = vld [vmem:[%s2240_s11 + $0x910] sm:$0xff]  ;;  %v5088_v40 = vrot.slane %v3690_v24, 1  ;;  %v4762_v62 = vrot.slane %v4151_v21, 5 }
 0x108   : > { %v315_v48 = vsel %vm243_vm0, %v5085_v7, %v5084_v59  ;;  %v1136_v39 = vadd.f32 %v1054_v33, %v889_v41  ;;  %v4187_v27 = vmul.f32 0.125, %v1876_v5  ;;  %v4196_v33 = vld [vmem:[%s2240_s11 + $0x378] sm:$0xf]  ;;  %v5092_v5 = vrot.slane %v3678_v12, 7 }
 0x109   : > { %v396_v13 = vadd.f32 %v315_v48, %v149_v38  ;;  %v562_v1 = vsel %vm490_vm1, %v5087_v30, %v5086_v8  ;;  %v2025_v7 = vsel %vm243_vm0, %v5088_v40, %v4759_v55  ;;  %v4761_v38 = vrot.slane %v4148_v6, 4  ;;  %v4184_v48 = vld [vmem:[%s2240_s11 + $0x258] sm:$0x7] }
 0x10a   : > { %2115 = vst [vmem:[%s2367_s15 + $0xb8] sm:$0xff] %v2025_v7  ;;  %5089 = vst [vmem:[#allocation14_spill] sm:$0xff] %v4187_v27  ;;  %v5090_v8 = vrot.slane %v3700_v46, 3  ;;  %v4763_v30 = vrot.slane %v4165_v28, 6  ;;  %v4199_v41 = vld [vmem:[%s2240_s11 + $0x498] sm:$0x1f]  ;;  %v1383_v40 = vadd.f32 %v1301_v2, %v1136_v39 }
 0x10b   : > { %v643_v59 = vadd.f32 %v562_v1, %v396_v13  ;;  %v5091_v7 = vrot.slane %v4116_v42, 7  ;;  %v5093_v46 = vrot.slane %v3710_v60, 4  ;;  %v4213_v55 = vld [vmem:[%s2240_s11 + $0x5b8] sm:$0x3f]  ;;  %v5094_v12 = vrot.slane %v3713_v25, 5 }
 0x10c   : > { %v809_v24 = vsel %vm737_vm2, %v5090_v8, %v4760_v43  ;;  %v4765_v43 = vrot.slane %v4187_v27, 1  ;;  %v4766_v60 = vrot.slane %v4184_v48, 1  ;;  %v4231_v8 = vld [vmem:[%s2240_s11 + $0x6d8] sm:$0x7f]  ;;  %v5099_v27 = vrot.slane %v4174_v61, 7 }
 0x10d   : > { %v1783_v13 = vsel %vm1725_vm6, %v5092_v5, %v5091_v7  ;;  %v1056_v1 = vsel %vm984_vm3, %v5093_v46, %v4761_v38  ;;  %v890_v2 = vadd.f32 %v809_v24, %v643_v59  ;;  %v1303_v39 = vsel %vm1231_vm4, %v5094_v12, %v4762_v62  ;;  %v150_v7 = vld [vmem:[%s2240_s11 + $0x108] sm:$0xff]  ;;  %v4234_v25 = vld [vmem:[%s2240_s11 + $0x7f8] sm:$0xff]  ;;  %v4248_v24 = vld [vmem:[%s2240_s11 + $0x260] sm:$0x7] }
 0x10e   : > { %v1630_v5 = vadd.f32 %v1548_v17, %v1383_v40  ;;  %v5095_v46 = vrot.slane %v3727_v52, 6  ;;  %v5096_v12 = vld [vmem:[#allocation5_spill] sm:$0xff]  ;;  %v5098_v52 = vrot.slane %v3746_v32, 1  ;;  %v5102_v32 = vrot.slane %v3758_v15, 2 }
 0x10f   : > { %v5097_v17 = vrot.slane %v5096_v12, 1  ;;  %v1137_v62 = vadd.f32 %v1056_v1, %v890_v2  ;;  %v5100_v12 = vrot.slane %v3736_v14, 7  ;;  %v5104_v14 = vrot.slane %v3761_v45, 3  ;;  %v4284_v45 = vld [vmem:[%s2240_s11 + $0x4a0] sm:$0x1f] }
 0x110   : > { %v1550_v38 = vsel %vm1478_vm5, %v5095_v46, %v4763_v30  ;;  %v317_v46 = vsel %vm243_vm0, %v5098_v52, %v4766_v60  ;;  %v4767_v30 = vrot.slane %v4213_v55, 4  ;;  %v1877_v59 = vadd.f32 %v1783_v13, %v1630_v5  ;;  %v4265_v60 = vld [vmem:[%s2240_s11 + $0x380] sm:$0xf] }
 0x111   : > { %v2027_v40 = vsel %vm243_vm0, %v5097_v17, %v4765_v43  ;;  %v1785_v1 = vsel %vm1725_vm6, %v5100_v12, %v5099_v27  ;;  %v397_v2 = vadd.f32 %v317_v46, %v150_v7  ;;  %v5101_v17 = vrot.slane %v4196_v33, 2  ;;  %v4262_v43 = vld [vmem:[%s2240_s11 + $0x918] sm:$0xff] }
 0x112   : > { %2116 = vst [vmem:[%s2367_s15 + $0xc0] sm:$0xff] %v2027_v40  ;;  %v1384_v13 = vadd.f32 %v1303_v39, %v1137_v62  ;;  %v5103_v5 = vrot.slane %v4199_v41, 3  ;;  %v4768_v7 = vrot.slane %v4231_v8, 5  ;;  %v4769_v40 = vrot.slane %v4234_v25, 6  ;;  %v151_v39 = vld [vmem:[%s2240_s11 + $0x110] sm:$0xff] }
 0x113   : > { %v564_v52 = vsel %vm490_vm1, %v5102_v32, %v5101_v17  ;;  %v4274_v15 = vmul.f32 0.125, %v1877_v59  ;;  %v5106_v12 = vrot.slane %v3775_v63, 4  ;;  %v4772_v17 = vrot.slane %v4248_v24, 1  ;;  %v4294_v63 = vld [vmem:[%s2240_s11 + $0x5c0] sm:$0x3f] }
 0x114   : > { %v811_v27 = vsel %vm737_vm2, %v5104_v14, %v5103_v5  ;;  %v644_v46 = vadd.f32 %v564_v52, %v397_v2  ;;  %v1631_v32 = vadd.f32 %v1550_v38, %v1384_v13  ;;  %v5107_v59 = vrot.slane %v3793_v23, 5  ;;  %v4297_v14 = vld [vmem:[%s2240_s11 + $0x6e0] sm:$0x7f] }
 0x115   : > { %5105 = vst [vmem:[#allocation15_spill] sm:$0xff] %v4274_v15  ;;  %v1058_v62 = vsel %vm984_vm3, %v5106_v12, %v4767_v30  ;;  %v4770_v12 = vrot.slane %v4274_v15, 1  ;;  %v5108_v38 = vrot.slane %v3796_v0, 6  ;;  %v5109_v13 = vrot.slane %v3810_v4, 1 }
 0x116   : > { %v1305_v5 = vsel %vm1231_vm4, %v5107_v59, %v4768_v7  ;;  %v891_v30 = vadd.f32 %v811_v27, %v644_v46  ;;  %v4311_v7 = vld [vmem:[%s2240_s11 + $0x800] sm:$0xff]  ;;  %v1878_v2 = vadd.f32 %v1785_v1, %v1631_v32  ;;  %v5110_v27 = vrot.slane %v4265_v60, 2 }
 0x117   : > { %v1552_v23 = vsel %vm1478_vm5, %v5108_v38, %v4769_v40  ;;  %v319_v59 = vsel %vm243_vm0, %v5109_v13, %v4772_v17  ;;  %v5111_v46 = vrot.slane %v3827_v20, 2  ;;  %v4771_v38 = vrot.slane %v4284_v45, 3  ;;  %v4320_v40 = vld [vmem:[%s2240_s11 + $0x920] sm:$0xff] }
 0x118   : > { %v398_v52 = vadd.f32 %v319_v59, %v151_v39  ;;  %v5112_v4 = vrot.slane %v3836_v19, 1  ;;  %v1138_v1 = vadd.f32 %v1058_v62, %v891_v30  ;;  %v4773_v39 = vrot.slane %v4294_v63, 4  ;;  %v4330_v59 = vld [vmem:[%s2240_s11 + $0x268] sm:$0x7] }
 0x119   : > { %v566_v0 = vsel %vm490_vm1, %v5111_v46, %v5110_v27  ;;  %v4775_v32 = vrot.slane %v4297_v14, 5  ;;  %v4333_v20 = vmul.f32 0.125, %v1878_v2  ;;  %v5114_v46 = vrot.slane %v3846_v11, 3  ;;  %v4342_v30 = vld [vmem:[%s2240_s11 + $0x388] sm:$0xf] }
 0x11a   : > { %v2029_v13 = vsel %vm243_vm0, %v5112_v4, %v4770_v12  ;;  %v645_v27 = vadd.f32 %v566_v0, %v398_v52  ;;  %v4774_v4 = vrot.slane %v4311_v7, 6  ;;  %v4345_v62 = vld [vmem:[%s2240_s11 + $0x4a8] sm:$0x1f]  ;;  %v1385_v12 = vadd.f32 %v1305_v5, %v1138_v1 }
 0x11b   : > { %2117 = vst [vmem:[%s2367_s15 + $0xc8] sm:$0xff] %v2029_v13  ;;  %5113 = vst [vmem:[#allocation3_spill] sm:$0xff] %v4333_v20  ;;  %v813_v19 = vsel %vm737_vm2, %v5114_v46, %v4771_v38  ;;  %v5115_v13 = vrot.slane %v4262_v43, 7  ;;  %v5116_v2 = vrot.slane %v3824_v35, 7  ;;  %v5117_v11 = vrot.slane %v3856_v34, 4 }
 0x11c   : > { %v4359_v38 = vld [vmem:[%s2240_s11 + $0x5c8] sm:$0x3f]  ;;  %v4776_v17 = vrot.slane %v4333_v20, 1  ;;  %v892_v5 = vadd.f32 %v813_v19, %v645_v27  ;;  %v5118_v35 = vrot.slane %v3859_v47, 5  ;;  %v4777_v34 = vrot.slane %v4330_v59, 1 }
 0x11d   : > { %v1787_v52 = vsel %vm1725_vm6, %v5116_v2, %v5115_v13  ;;  %v1060_v0 = vsel %vm984_vm3, %v5117_v11, %v4773_v39  ;;  %v152_v13 = vld [vmem:[%s2240_s11 + $0x118] sm:$0xff]  ;;  %v1632_v2 = vadd.f32 %v1552_v23, %v1385_v12  ;;  %v5119_v11 = vrot.slane %v3873_v44, 6  ;;  %v4377_v46 = vld [vmem:[%s2240_s11 + $0x6e8] sm:$0x7f]  ;;  %v153_v19 = vld [vmem:[%s2240_s11 + $0x120] sm:$0x3] }
 0x11e   : > { %v1307_v1 = vsel %vm1231_vm4, %v5118_v35, %v4775_v32  ;;  %v4380_v47 = vld [vmem:[%s2240_s11 + $0x808] sm:$0xff]  ;;  %v5121_v35 = vrot.slane %v3895_v22, 1  ;;  %v1139_v23 = vadd.f32 %v1060_v0, %v892_v5  ;;  %v5122_v44 = vrot.slane %v3892_v50, 1 }
 0x11f   : > { %v1554_v39 = vsel %vm1478_vm5, %v5119_v11, %v4774_v4  ;;  %5120 = vst [vmem:[#allocation4_spill] sm:$0xff] %v4380_v47  ;;  %v4394_v32 = vld [vmem:[%s2240_s11 + $0x928] sm:$0xff]  ;;  %v1879_v27 = vadd.f32 %v1787_v52, %v1632_v2  ;;  %v5123_v22 = vrot.slane %v4320_v40, 7  ;;  %v5125_v50 = vrot.slane %v4342_v30, 2 }
 0x120   : > { %v2031_v12 = vsel %vm243_vm0, %v5121_v35, %v4776_v17  ;;  %v321_v11 = vsel %vm243_vm0, %v5122_v44, %v4777_v34  ;;  %v5124_v35 = vrot.slane %v3882_v10, 7  ;;  %v5126_v44 = vrot.slane %v3904_v51, 2  ;;  %v1677_v34 = vld [vmem:[%s2240_s11 + $0x930] sm:$0x1]  ;;  %v1679_v51 = vld [vmem:[%s2240_s11 + $0x940] sm:$0x1] }
 0x121   : > { %2118 = vst [vmem:[%s2367_s15 + $0xd0] sm:$0xff] %v2031_v12  ;;  %v399_v5 = vadd.f32 %v321_v11, %v152_v13  ;;  %v1386_v4 = vadd.f32 %v1307_v1, %v1139_v23  ;;  %v5127_v20 = vrot.slane %v4345_v62, 3  ;;  %v5128_v12 = vld [vmem:[#allocation8_spill] sm:$0xff]  ;;  %v4416_v13 = vmul.f32 0.125, %v1879_v27  ;;  %v154_v1 = vld [vmem:[%s2240_s11 + $0x128] sm:$0x3] }
 0x122   : > { %v1789_v0 = vsel %vm1725_vm6, %v5124_v35, %v5123_v22  ;;  %v568_v17 = vsel %vm490_vm1, %v5126_v44, %v5125_v50  ;;  %v5129_v52 = vrot.slane %v5128_v12, 3  ;;  %v5130_v35 = vrot.slane %v3956_v3, 1  ;;  %v1678_v23 = vld [vmem:[%s2240_s11 + $0x938] sm:$0x1]  ;;  %v5135_v27 = vld [vmem:[#allocation7_spill] sm:$0xff] }
 0x123   : > { %v646_v11 = vadd.f32 %v568_v17, %v399_v5  ;;  %v1633_v44 = vadd.f32 %v1554_v39, %v1386_v4  ;;  %v5131_v12 = vrot.slane %v4359_v38, 4  ;;  %v5134_v22 = vrot.slane %v4377_v46, 5  ;;  %v155_v3 = vld [vmem:[%s2240_s11 + $0x130] sm:$0x3] }
 0x124   : > { %v815_v2 = vsel %vm737_vm2, %v5129_v52, %v5127_v20  ;;  %v400_v50 = vadd.f32 %v5130_v35, %v153_v19  ;;  %v5132_v20 = vld [vmem:[#allocation2_spill] sm:$0xff]  ;;  %v5136_v15 = vrot.slane %v5135_v27, 5  ;;  %v1792_v5 = vrot.slane %v1677_v34, 7 }
 0x125   : > { %v5133_v52 = vrot.slane %v5132_v20, 4  ;;  %v893_v35 = vadd.f32 %v815_v2, %v646_v11  ;;  %v5137_v39 = vrot.slane %v4380_v47, 6  ;;  %v5138_v4 = vrot.slane %v3942_v31, 6  ;;  %v156_v47 = vld [vmem:[%s2240_s11 + $0x138] sm:$0x3] }
 0x126   : > { %v1309_v17 = vsel %vm1231_vm4, %v5136_v15, %v5134_v22  ;;  %v1880_v27 = vadd.f32 %v1789_v0, %v1633_v44  ;;  %v5140_v15 = vrot.slane %v4394_v32, 7  ;;  %v5141_v34 = vrot.slane %v3970_v18, 7  ;;  %v5145_v0 = vld [vmem:[#allocation9_spill] sm:$0xff] }
 0x127   : > { %v1062_v10 = vsel %vm984_vm3, %v5133_v52, %v5131_v12  ;;  %v1556_v20 = vsel %vm1478_vm5, %v5138_v4, %v5137_v39  ;;  %v5139_v12 = vrot.slane %v3973_v49, 2  ;;  %v5142_v19 = vrot.slane %v4038_v57, 1 }
 0x128   : > { %v1791_v22 = vsel %vm1725_vm6, %v5141_v34, %v5140_v15  ;;  %v1794_v11 = vrot.slane %v1678_v23, 7  ;;  %v5143_v31 = vrot.slane %v4416_v13, 1  ;;  %v5144_v39 = vrot.slane %v3982_v16, 1  ;;  %v1680_v15 = vld [vmem:[%s2240_s11 + $0x948] sm:$0x1] }
 0x129   : > { %v647_v52 = vadd.f32 %v5139_v12, %v400_v50  ;;  %v401_v2 = vadd.f32 %v5142_v19, %v154_v1  ;;  %v1140_v50 = vadd.f32 %v1062_v10, %v893_v35  ;;  %v5146_v44 = vrot.slane %v5145_v0, 3  ;;  %v5150_v35 = vld [vmem:[#allocation6_spill] sm:$0xff] }
 0x12a   : > { %v2033_v49 = vsel %vm243_vm0, %v5144_v39, %v5143_v31  ;;  %v5147_v18 = vrot.slane %v4102_v54, 1  ;;  %v4462_v57 = vmul.f32 0.125, %v1880_v27  ;;  %v5148_v1 = vrot.slane %v4028_v53, 7 }
 0x12b   : > { %v894_v4 = vadd.f32 %v5146_v44, %v647_v52  ;;  %2119 = vst [vmem:[%s2367_s15 + $0xd8] sm:$0xff] %v2033_v49  ;;  %v5149_v19 = vrot.slane %v4050_v26, 2  ;;  %v1796_v34 = vrot.slane %v1679_v51, 7  ;;  %v1387_v10 = vadd.f32 %v1309_v17, %v1140_v50  ;;  %v157_v49 = vld [vmem:[%s2240_s11 + $0x140] sm:$0x3] }
 0x12c   : > { %v402_v12 = vadd.f32 %v5147_v18, %v155_v3  ;;  %v1793_v23 = vsel %vm1725_vm6, %v5148_v1, %v1792_v5  ;;  %v5151_v31 = vrot.slane %v5150_v35, 4  ;;  %v5152_v54 = vrot.slane %v4119_v56, 2  ;;  %v158_v18 = vld [vmem:[%s2240_s11 + $0x148] sm:$0x3] }
 0x12d   : > { %v648_v16 = vadd.f32 %v5149_v19, %v401_v2  ;;  %v5153_v39 = vrot.slane %v4184_v48, 1  ;;  %v2034_v53 = vrot.slane %v4462_v57, 1  ;;  %v5154_v5 = vrot.slane %v4053_v37, 3  ;;  %v5159_v37 = vld [vmem:[#allocation12_spill] sm:$0xff] }
 0x12e   : > { %v1141_v52 = vadd.f32 %v5151_v31, %v894_v4  ;;  %v649_v3 = vadd.f32 %v5152_v54, %v402_v12  ;;  %v5155_v2 = vrot.slane %v4116_v42, 7  ;;  %v1798_v17 = vrot.slane %v1680_v15, 7 }
 0x12f   : > { %v403_v27 = vadd.f32 %v5153_v39, %v156_v47  ;;  %v895_v26 = vadd.f32 %v5154_v5, %v648_v16  ;;  %v1634_v50 = vadd.f32 %v1556_v20, %v1387_v10  ;;  %v5156_v56 = vrot.slane %v4005_v29, 5  ;;  %v5165_v16 = vld [vmem:[#allocation10_spill] sm:$0xff]  ;;  %v1681_v39 = vld [vmem:[%s2240_s11 + $0x950] sm:$0x1] }
 0x130   : > { %v1795_v51 = vsel %vm1725_vm6, %v5155_v2, %v1794_v11  ;;  %v5157_v48 = vrot.slane %v4138_v9, 3  ;;  %v5158_v47 = vrot.slane %v4196_v33, 2  ;;  %v5160_v12 = vrot.slane %v5159_v37, 1  ;;  %v5161_v11 = vld [vmem:[#allocation11_spill] sm:$0xff] }
 0x131   : > { %v1388_v0 = vadd.f32 %v5156_v56, %v1141_v52  ;;  %v5162_v1 = vrot.slane %v5161_v11, 4  ;;  %v5163_v20 = vrot.slane %v4174_v61, 7  ;;  %v5164_v9 = vrot.slane %v4248_v24, 1 }
 0x132   : > { %v896_v44 = vadd.f32 %v5157_v48, %v649_v3  ;;  %v650_v4 = vadd.f32 %v5158_v47, %v403_v27  ;;  %v2035_v42 = vsel %vm243_vm0, %v5160_v12, %v2034_v53  ;;  %v1881_v33 = vadd.f32 %v1791_v22, %v1634_v50  ;;  %v5169_v27 = vld [vmem:[#allocation13_spill] sm:$0xff] }
 0x133   : > { %v1142_v15 = vadd.f32 %v5162_v1, %v895_v26  ;;  %v1797_v29 = vsel %vm1725_vm6, %v5163_v20, %v1796_v34  ;;  %v404_v19 = vadd.f32 %v5164_v9, %v157_v49  ;;  %2120 = vst [vmem:[%s2367_s15 + $0xe0] sm:$0xff] %v2035_v42  ;;  %v5166_v10 = vrot.slane %v5165_v16, 6 }
 0x134   : > { %v5167_v31 = vrot.slane %v4148_v6, 4  ;;  %v5168_v54 = vrot.slane %v4199_v41, 3  ;;  %v5170_v61 = vrot.slane %v5169_v27, 5  ;;  %v5171_v34 = vrot.slane %v4262_v43, 7 }
 0x135   : > { %v1635_v35 = vadd.f32 %v5166_v10, %v1388_v0  ;;  %v5172_v49 = vrot.slane %v4265_v60, 2  ;;  %v5173_v26 = vrot.slane %v4330_v59, 1  ;;  %v1923_v50 = vmul.f32 0.125, %v1881_v33 }
 0x136   : > { %v1143_v52 = vadd.f32 %v5167_v31, %v896_v44  ;;  %v897_v3 = vadd.f32 %v5168_v54, %v650_v4  ;;  %v1389_v5 = vadd.f32 %v5170_v61, %v1142_v15  ;;  %v1799_v24 = vsel %vm1725_vm6, %v5171_v34, %v1798_v17  ;;  %v1682_v44 = vld [vmem:[%s2240_s11 + $0x958] sm:$0x1] }
 0x137   : > { %v651_v22 = vadd.f32 %v5172_v49, %v404_v19  ;;  %v405_v2 = vadd.f32 %v5173_v26, %v158_v18  ;;  %v1882_v6 = vadd.f32 %v1793_v23, %v1635_v35  ;;  %v5174_v56 = vrot.slane %v4151_v21, 5  ;;  %v5187_v35 = vld [vmem:[#allocation14_spill] sm:$0xff] }
 0x138   : > { %v5175_v0 = vrot.slane %v4213_v55, 4  ;;  %v5176_v47 = vrot.slane %v4088_v36, 6  ;;  %v5177_v17 = vrot.slane %v4284_v45, 3  ;;  %v1800_v4 = vrot.slane %v1681_v39, 7 }
 0x139   : > { %v1390_v41 = vadd.f32 %v5174_v56, %v1143_v52  ;;  %v5178_v59 = vrot.slane %v4342_v30, 2  ;;  %v2036_v37 = vrot.slane %v1923_v50, 1  ;;  %v1924_v23 = vmul.f32 0.125, %v1882_v6 }
 0x13a   : > { %v1144_v48 = vadd.f32 %v5175_v0, %v897_v3  ;;  %v1636_v43 = vadd.f32 %v5176_v47, %v1389_v5  ;;  %v898_v60 = vadd.f32 %v5177_v17, %v651_v22  ;;  %v5179_v21 = vrot.slane %v4165_v28, 6 }
 0x13b   : > { %v652_v18 = vadd.f32 %v5178_v59, %v405_v2  ;;  %v5180_v55 = vrot.slane %v4231_v8, 5  ;;  %v5181_v36 = vrot.slane %v4294_v63, 4  ;;  %v5182_v45 = vrot.slane %v4345_v62, 3 }
 0x13c   : > { %v1637_v12 = vadd.f32 %v5179_v21, %v1390_v41  ;;  %v1883_v11 = vadd.f32 %v1795_v51, %v1636_v43  ;;  %v1802_v20 = vrot.slane %v1682_v44, 7  ;;  %v5183_v30 = vrot.slane %v4128_v58, 1 }
 0x13d   : > { %v1391_v42 = vadd.f32 %v5180_v55, %v1144_v48  ;;  %v1145_v1 = vadd.f32 %v5181_v36, %v898_v60  ;;  %v899_v15 = vadd.f32 %v5182_v45, %v652_v18  ;;  %v2038_v19 = vrot.slane %v1924_v23, 1 }
 0x13e   : > { %v2037_v9 = vsel %vm243_vm0, %v5183_v30, %v2036_v37  ;;  %v1884_v28 = vadd.f32 %v1797_v29, %v1637_v12  ;;  %v5184_v33 = vrot.slane %v4234_v25, 6  ;;  %v1925_v8 = vmul.f32 0.125, %v1883_v11 }
 0x13f   : > { %2121 = vst [vmem:[%s2367_s15 + $0xe8] sm:$0xff] %v2037_v9  ;;  %v5185_v51 = vrot.slane %v4297_v14, 5  ;;  %v5186_v62 = vrot.slane %v4359_v38, 4  ;;  %v5188_v31 = vrot.slane %v5187_v35, 1  ;;  %2128 = vst [vmem:[%s2367_s15 + $0x120] sm:$0x1] %v2038_v19 }
 0x140   : > { %v1638_v16 = vadd.f32 %v5184_v33, %v1391_v42  ;;  %v1926_v52 = vmul.f32 0.125, %v1884_v28  ;;  %v5189_v25 = vrot.slane %v4320_v40, 7  ;;  %v2040_v14 = vrot.slane %v1925_v8, 1  ;;  %v5193_v40 = vld [vmem:[#allocation15_spill] sm:$0xff] }
 0x141   : > { %v1392_v63 = vadd.f32 %v5185_v51, %v1145_v1  ;;  %v1146_v10 = vadd.f32 %v5186_v62, %v899_v15  ;;  %v2039_v58 = vsel %vm243_vm0, %v5188_v31, %v2038_v19  ;;  %v5190_v3 = vrot.slane %v4311_v7, 6  ;;  %v5195_v7 = vld [vmem:[#allocation4_spill] sm:$0xff] }
 0x142   : > { %v1885_v29 = vadd.f32 %v1799_v24, %v1638_v16  ;;  %v1801_v54 = vsel %vm1725_vm6, %v5189_v25, %v1800_v4  ;;  %2122 = vst [vmem:[%s2367_s15 + $0xf0] sm:$0xff] %v2039_v58  ;;  %v5191_v39 = vrot.slane %v4377_v46, 5  ;;  %v2042_v61 = vrot.slane %v1926_v52, 1  ;;  %2129 = vst [vmem:[%s2367_s15 + $0x128] sm:$0x1] %v2040_v14  ;;  %v5197_v46 = vld [vmem:[#allocation3_spill] sm:$0xff] }
 0x143   : > { %v1639_v38 = vadd.f32 %v5190_v3, %v1392_v63  ;;  %v5192_v34 = vrot.slane %v4394_v32, 7  ;;  %v5194_v49 = vrot.slane %v5193_v40, 1  ;;  %v5196_v2 = vrot.slane %v5195_v7, 6 }
 0x144   : > { %v1393_v27 = vadd.f32 %v5191_v39, %v1146_v10  ;;  %v1927_v5 = vmul.f32 0.125, %v1885_v29  ;;  %v5198_v6 = vrot.slane %v5197_v46, 1  ;;  %2130 = vst [vmem:[%s2367_s15 + $0x130] sm:$0x1] %v2042_v61  ;;  %v5199_v48 = vrot.slane %v4416_v13, 1 }
 0x145   : > { %v1803_v24 = vsel %vm1725_vm6, %v5192_v34, %v1802_v20  ;;  %v2041_v22 = vsel %vm243_vm0, %v5194_v49, %v2040_v14  ;;  %v1886_v26 = vadd.f32 %v1801_v54, %v1639_v38 }
 0x146   : > { %v1640_v50 = vadd.f32 %v5196_v2, %v1393_v27  ;;  %2123 = vst [vmem:[%s2367_s15 + $0xf8] sm:$0xff] %v2041_v22  ;;  %v2043_v56 = vsel %vm243_vm0, %v5198_v6, %v2042_v61  ;;  %v2044_v32 = vrot.slane %v1927_v5, 1 }
 0x147   : > { %2124 = vst [vmem:[%s2367_s15 + $0x100] sm:$0xff] %v2043_v56  ;;  %v1928_v41 = vmul.f32 0.125, %v1886_v26 }
 0x148   : > { %v1887_v0 = vadd.f32 %v1803_v24, %v1640_v50  ;;  %v2045_v44 = vsel %vm243_vm0, %v5199_v48, %v2044_v32  ;;  %2131 = vst [vmem:[%s2367_s15 + $0x138] sm:$0x1] %v2044_v32 }
 0x149   : > { %2125 = vst [vmem:[%s2367_s15 + $0x108] sm:$0xff] %v2045_v44  ;;  %v2046_v47 = vrot.slane %v1928_v41, 1 }
 0x14a   : > { %v1929_v43 = vmul.f32 0.125, %v1887_v0 }
 0x14b   : > { %v2047_v17 = vsel %vm243_vm0, %v2034_v53, %v2046_v47  ;;  %2132 = vst [vmem:[%s2367_s15 + $0x140] sm:$0x1] %v2046_v47 }
 0x14c   : > { %v2048_v60 = vrot.slane %v1929_v43, 1  ;;  %2126 = vst [vmem:[%s2367_s15 + $0x110] sm:$0xff] %v2047_v17 }
 0x14e   : > { %v2049_v4 = vsel %vm243_vm0, %v2036_v37, %v2048_v60  ;;  %2133 = vst [vmem:[%s2367_s15 + $0x148] sm:$0x1] %v2048_v60 }
 0x14f   : > { %2127 = vst [vmem:[%s2367_s15 + $0x118] sm:$0xff] %v2049_v4 }
 0x150 PF: > { %s11_s6 = sadd.s32 1, %s2214_s6  }
 0x151   : > { %p8_p4 = scmp.ge.s32.totalorder %s11_s6, 4  }
 0x153   :  { %10 = sbr.rel (!%p8_p4) target bundleno = 1 (0x1), region = 54 }

</bundles_post_ra>
